<compile_context>
chip_gen: v5e
topology: v5e:2x2
jax: 0.10.0
libtpu: 0.0.40
codegen_flags: <defaults>
</compile_context>

<pallas_src>
import functools

import jax
import jax.numpy as jnp
from jax import lax
from jax.experimental import pallas as pl
from jax.experimental.pallas import tpu as pltpu


# ----------------------------- Pallas kernel -------------------------------

# (parity plane k = 2p+q, padded-row start, padded-col start), tap-major order t = 3*di+dj.
# Row/col start 0 reads the halo/zero-pad row/col (conv taps with di==0 / dj==0).
_TAPS = (
    (3, 0, 0), (2, 0, 1), (3, 0, 1),
    (1, 1, 0), (0, 1, 1), (1, 1, 1),
    (3, 1, 0), (2, 1, 1), (3, 1, 1),
)


def _make_kernel(TH, Wo, C, Cout, per_tap):
    """Fused stride-2 3x3 conv with the averaged pixel-unshuffle residual and the
    PyTorch output-channel order folded into the weights (BN affine pre-applied).

    u_ref: (4, TH+1, Wo+1, C) bf16  BN'd parity tile; row 0 = halo / top pad, col 0 = left pad
    w_ref: (9*C, Cout)        bf16  tap-major conv weights (+0.5 residual fold)
    b_ref: (1, Cout)          f32   conv bias
    o_ref: (TH, Wo, Cout)           NHWC output tile (single lane-dense store)
    """

    def kernel(u_ref, w_ref, b_ref, o_ref):
        if per_tap:
            # Real model sizes: nine K=C matmuls accumulated in f32 (no im2col slab copy).
            acc = None
            for t, (k, r0, c0) in enumerate(_TAPS):
                lhs = u_ref[k, r0:r0 + TH, c0:c0 + Wo, :].reshape(TH * Wo, C)
                part = jnp.dot(lhs, w_ref[t * C:(t + 1) * C, :],
                               preferred_element_type=jnp.float32)
                acc = part if acc is None else acc + part
        else:
            # Small C: K = 9C single matmul (K < 128 is lane-padded anyway).
            slab = jnp.concatenate(
                [u_ref[k, r0:r0 + TH, c0:c0 + Wo, :] for (k, r0, c0) in _TAPS], axis=-1)
            acc = jnp.dot(slab.reshape(TH * Wo, 9 * C), w_ref[...],
                          preferred_element_type=jnp.float32)
        out = (acc + b_ref[...]).reshape(TH, Wo, Cout)
        o_ref[...] = out.astype(o_ref.dtype)      # one lane-dense NHWC store

    return kernel


# --------------------------- VMEM / tile planning ---------------------------

def _working_set_bytes(TH, Wo, C, Cout, per_tap, out_bytes):
    u_blk = 4 * (TH + 1) * (Wo + 1) * C * 2          # bf16 parity tile
    w_blk = 9 * C * Cout * 2                         # bf16 weight matrix
    o_blk = TH * Wo * Cout * out_bytes               # output tile
    acc = TH * Wo * Cout * 4                         # f32 accumulator temporary
    tmp = (2 * TH * Wo * C * 2) if per_tap else (TH * Wo * 9 * C * 2)  # tap ops / im2col slab
    return 2 * (u_blk + w_blk + o_blk) + acc + tmp   # inputs & outputs double-buffered


def _plan_tiles(Ho, Wo, C, Cout, per_tap, tile_h, out_bytes):
    try:
        vmem_cap = int(pltpu.get_tpu_info().vmem_capacity_bytes)
    except Exception:
        vmem_cap = 64 * 1024 * 1024                  # conservative fallback = v7x per-core VMEM
    budget = int(0.35 * vmem_cap)                    # per-step working-set target (headroom)
    cands = sorted({t for t in range(8, Ho + 1, 8) if Ho % t == 0} | {Ho})
    if tile_h is not None:
        TH = int(tile_h)
        assert Ho % TH == 0, (Ho, TH)
    else:
        fits = [t for t in cands
                if _working_set_bytes(t, Wo, C, Cout, per_tap, out_bytes) <= budget]
        # TODO(synk): if even the smallest row tile exceeds VMEM a column-tiled grid axis
        # would be needed; fall back to the smallest row tile for now.
        TH = max(fits) if fits else min(cands)
    ws = _working_set_bytes(TH, Wo, C, Cout, per_tap, out_bytes)
    vmem_limit = int(min(vmem_cap, max(2 * ws, 32 * 1024 * 1024)))
    return TH, vmem_limit


# ------------------------------ JAX wrapper --------------------------------

@functools.partial(jax.jit, static_argnames=("TH", "per_tap", "vmem_limit", "out_dtype"))
def _resample_down_impl(x, gamma, beta, conv_w, conv_b, eps, *,
                        TH, per_tap, vmem_limit, out_dtype):
    B, C, H, W = x.shape
    Ho, Wo, Cout, half = H // 2, W // 2, 2 * C, C // 2
    NT = Ho // TH

    xf = x.astype(jnp.float32)
    # Training-mode BatchNorm batch statistics (biased var), two-pass f32 XLA reduce.
    mean = jnp.mean(xf, axis=(0, 2, 3))
    var = jnp.var(xf, axis=(0, 2, 3))
    scale = gamma.astype(jnp.float32) / jnp.sqrt(var + eps)
    shift = beta.astype(jnp.float32) - mean * scale
    # BN affine hoisted here (f32, fused by XLA into the same pass as the parity transpose).
    xbn = xf * scale[None, :, None, None] + shift[None, :, None, None]

    # Parity tensor U[b, 2p+q, oh, ow, c] = xbn[b, c, 2oh+p, 2ow+q] in bf16 (MXU operand),
    # with one zero row on top and one zero col on the left = the conv's zero padding in
    # BN'd space (BN is applied before the conv pads, so the pad value is exactly 0).
    U = jnp.transpose(xbn.reshape(B, C, Ho, 2, Wo, 2), (0, 3, 5, 2, 4, 1))
    U = U.reshape(B, 4, Ho, Wo, C).astype(jnp.bfloat16)
    U = jnp.pad(U, ((0, 0), (0, 0), (1, 0), (1, 0), (0, 0)))        # (B, 4, Ho+1, Wo+1, C)
    # Row tiles carry their one-row top halo contiguously: tile i = padded rows [i*TH, i*TH+TH].
    row_idx = jnp.arange(NT)[:, None] * TH + jnp.arange(TH + 1)[None, :]
    U_t = U[:, :, row_idx]                                          # (B, 4, NT, TH+1, Wo+1, C)

    # Single tap-major (9*C, Cout) weight operand: Wmat[(3di+dj)*C + ic, oc] = conv_w[oc,ic,di,dj].
    # The averaged pixel-unshuffle residual is folded into the UNSHIFTED taps (4,5,7,8), which
    # never read the padded row/col, so border semantics are untouched; PyTorch output-channel
    # order is kept -> no post-kernel channel gather.
    Wmat = jnp.transpose(conv_w.astype(jnp.float32), (2, 3, 1, 0)).reshape(9 * C, Cout)
    oc = jnp.arange(Cout)
    cp = oc // 4                                                    # pixel_unshuffle: oc = 4*cp + k
    t0 = jnp.array([4, 5, 7, 8], jnp.int32)[oc % 4]                 # unshifted tap of parity k
    Wmat = Wmat.at[t0 * C + cp, oc].add(0.5)
    Wmat = Wmat.at[t0 * C + cp + half, oc].add(0.5)
    Wmat = Wmat.astype(jnp.bfloat16)

    out_nhwc = pl.pallas_call(
        _make_kernel(TH, Wo, C, Cout, per_tap),
        out_shape=jax.ShapeDtypeStruct((B, Ho, Wo, Cout), out_dtype),
        grid=(B, NT),
        in_specs=[
            pl.BlockSpec((None, 4, None, TH + 1, Wo + 1, C),
                         lambda b, i: (b, 0, i, 0, 0, 0)),
            pl.BlockSpec((9 * C, Cout), lambda b, i: (0, 0)),
            pl.BlockSpec((1, Cout), lambda b, i: (0, 0)),
        ],
        out_specs=pl.BlockSpec((None, TH, Wo, Cout), lambda b, i: (b, i, 0, 0)),
        compiler_params=pltpu.CompilerParams(
            dimension_semantics=("parallel", "parallel"),
            vmem_limit_bytes=vmem_limit),
    )(U_t, Wmat, conv_b.astype(jnp.float32)[None, :])

    # One fused XLA transpose back to the module's NCHW layout.
    return jnp.transpose(out_nhwc, (0, 3, 1, 2))


def resample_block_down(x, gamma, beta, conv_w, conv_b, eps=1e-5, tile_h=None,
                        out_dtype=jnp.float32):
    B, C, H, W = x.shape
    assert C % 2 == 0 and H % 2 == 0 and W % 2 == 0, (C, H, W)
    Ho, Wo, Cout = H // 2, W // 2, 2 * C
    per_tap = C >= 128       # review: accumulate nine K=C matmuls at real model sizes
    TH, vmem_limit = _plan_tiles(Ho, Wo, C, Cout, per_tap, tile_h,
                                 out_bytes=jnp.dtype(out_dtype).itemsize)
    return _resample_down_impl(x, gamma, beta, conv_w, conv_b, eps,
                               TH=TH, per_tap=per_tap, vmem_limit=vmem_limit,
                               out_dtype=out_dtype)


# --------------------------- pure-JAX reference ----------------------------

def reference_forward(x, gamma, beta, conv_w, conv_b, eps=1e-5):
    B, C, H, W = x.shape
    mean = jnp.mean(x, axis=(0, 2, 3), keepdims=True)
    var = jnp.var(x, axis=(0, 2, 3), keepdims=True)
    xb = (x - mean) / jnp.sqrt(var + eps) * gamma.reshape(1, C, 1, 1) \
        + beta.reshape(1, C, 1, 1)
    Ho, Wo = H // 2, W // 2
    ru = xb.reshape(B, C, Ho, 2, Wo, 2).transpose(0, 1, 3, 5, 2, 4)
    ru = ru.reshape(B, 4 * C, Ho, Wo)               # F.pixel_unshuffle(xb, 2)
    r = (ru[:, :2 * C] + ru[:, 2 * C:]) * 0.5
    conv = lax.conv_general_dilated(
        xb, conv_w, window_strides=(2, 2), padding=((1, 1), (1, 1)),
        dimension_numbers=("NCHW", "OIHW", "NCHW"))
    return conv + conv_b.reshape(1, -1, 1, 1) + r


# --------------------------------- main ------------------------------------

if __name__ == "__main__":
    key = jax.random.PRNGKey(0)
    keys = jax.random.split(key, 6)

    def run_case(B, C, H, W, tile_h, seed_keys, atol):
        k1, k2, k3 = seed_keys
        x = jax.random.normal(k1, (B, C, H, W), dtype=jnp.float32)
        gamma = 1.0 + 0.1 * jnp.arange(C, dtype=jnp.float32)          # BN weight
        beta = 0.05 * jnp.arange(C, dtype=jnp.float32)                # BN bias
        fan_in = C * 9
        conv_w = jax.random.normal(k2, (2 * C, C, 3, 3), jnp.float32) / jnp.sqrt(fan_in)
        conv_b = 0.02 * jax.random.normal(k3, (2 * C,), jnp.float32)

        out = resample_block_down(x, gamma, beta, conv_w, conv_b, tile_h=tile_h)
        out = jax.block_until_ready(out)
        ref = reference_forward(x, gamma, beta, conv_w, conv_b)
        assert out.shape == (B, 2 * C, H // 2, W // 2), out.shape
        err = float(jnp.max(jnp.abs(out - ref)))
        # bf16 MXU operands compared against a pure-f32 reference -> bf16-level tolerance.
        assert jnp.allclose(out, ref, rtol=5e-2, atol=atol), err
        return err

    # Small-C config: single 9C-slab matmul path; tile_h=8 -> 2 row tiles, exercising both
    # the zero-halo (top) tile and a real-halo tile.
    run_case(2, 4, 32, 32, 8, keys[:3], atol=5e-2)
    # Model-size channels: per-tap K=C accumulation path, automatic row tile / VMEM plan.
    run_case(1, 128, 16, 16, None, keys[3:], atol=8e-2)

    print("KERNEL_OK")
</pallas_src>

<mosaic_0001>
module attributes {stable_mosaic.version = 11 : i64} {
  func.func @kernel(%arg0: i32, %arg1: i32, %arg2: memref<1x4x1x9x17x4xbf16, #tpu.memory_space<vmem>>, %arg3: memref<36x8xbf16, #tpu.memory_space<vmem>>, %arg4: memref<1x8xf32, #tpu.memory_space<vmem>>, %arg5: memref<1x8x16x8xf32, #tpu.memory_space<vmem>>) attributes {dimension_semantics = [#tpu.dimension_semantics<parallel>, #tpu.dimension_semantics<parallel>], iteration_bounds = array<i64: 2, 2>, scalar_prefetch = 0 : i64, scratch_operands = 0 : i64, tpu.core_type = #tpu.core_type<tc>, window_params = [{transform_indices = @transform_0, window_bounds = array<i64: 1, 4, 1, 9, 17, 4>}, {pipeline_mode = #tpu.pipeline_mode<synchronous>, transform_indices = @transform_1, window_bounds = array<i64: 36, 8>}, {pipeline_mode = #tpu.pipeline_mode<synchronous>, transform_indices = @transform_2, window_bounds = array<i64: 1, 8>}, {transform_indices = @transform_3, window_bounds = array<i64: 1, 8, 16, 8>}]} {
    %c0 = arith.constant 0 : index
    %c3 = arith.constant 3 : index
    %c0_0 = arith.constant 0 : index
    %c0_1 = arith.constant 0 : index
    %c0_2 = arith.constant 0 : index
    %c0_3 = arith.constant 0 : index
    %0 = vector.load %arg2[%c0, %c3, %c0_0, %c0_1, %c0_2, %c0_3] : memref<1x4x1x9x17x4xbf16, #tpu.memory_space<vmem>>, vector<1x1x1x8x16x4xbf16>
    %1 = vector.shape_cast %0 : vector<1x1x1x8x16x4xbf16> to vector<8x16x4xbf16>
    %c0_4 = arith.constant 0 : index
    %c2 = arith.constant 2 : index
    %c0_5 = arith.constant 0 : index
    %c0_6 = arith.constant 0 : index
    %c1 = arith.constant 1 : index
    %c0_7 = arith.constant 0 : index
    %2 = vector.load %arg2[%c0_4, %c2, %c0_5, %c0_6, %c1, %c0_7] : memref<1x4x1x9x17x4xbf16, #tpu.memory_space<vmem>>, vector<1x1x1x8x16x4xbf16>
    %3 = vector.shape_cast %2 : vector<1x1x1x8x16x4xbf16> to vector<8x16x4xbf16>
    %c0_8 = arith.constant 0 : index
    %c3_9 = arith.constant 3 : index
    %c0_10 = arith.constant 0 : index
    %c0_11 = arith.constant 0 : index
    %c1_12 = arith.constant 1 : index
    %c0_13 = arith.constant 0 : index
    %4 = vector.load %arg2[%c0_8, %c3_9, %c0_10, %c0_11, %c1_12, %c0_13] : memref<1x4x1x9x17x4xbf16, #tpu.memory_space<vmem>>, vector<1x1x1x8x16x4xbf16>
    %5 = vector.shape_cast %4 : vector<1x1x1x8x16x4xbf16> to vector<8x16x4xbf16>
    %c0_14 = arith.constant 0 : index
    %c1_15 = arith.constant 1 : index
    %c0_16 = arith.constant 0 : index
    %c1_17 = arith.constant 1 : index
    %c0_18 = arith.constant 0 : index
    %c0_19 = arith.constant 0 : index
    %6 = vector.load %arg2[%c0_14, %c1_15, %c0_16, %c1_17, %c0_18, %c0_19] : memref<1x4x1x9x17x4xbf16, #tpu.memory_space<vmem>>, vector<1x1x1x8x16x4xbf16>
    %7 = vector.shape_cast %6 : vector<1x1x1x8x16x4xbf16> to vector<8x16x4xbf16>
    %c0_20 = arith.constant 0 : index
    %c0_21 = arith.constant 0 : index
    %c0_22 = arith.constant 0 : index
    %c1_23 = arith.constant 1 : index
    %c1_24 = arith.constant 1 : index
    %c0_25 = arith.constant 0 : index
    %8 = vector.load %arg2[%c0_20, %c0_21, %c0_22, %c1_23, %c1_24, %c0_25] : memref<1x4x1x9x17x4xbf16, #tpu.memory_space<vmem>>, vector<1x1x1x8x16x4xbf16>
    %9 = vector.shape_cast %8 : vector<1x1x1x8x16x4xbf16> to vector<8x16x4xbf16>
    %c0_26 = arith.constant 0 : index
    %c1_27 = arith.constant 1 : index
    %c0_28 = arith.constant 0 : index
    %c1_29 = arith.constant 1 : index
    %c1_30 = arith.constant 1 : index
    %c0_31 = arith.constant 0 : index
    %10 = vector.load %arg2[%c0_26, %c1_27, %c0_28, %c1_29, %c1_30, %c0_31] : memref<1x4x1x9x17x4xbf16, #tpu.memory_space<vmem>>, vector<1x1x1x8x16x4xbf16>
    %11 = vector.shape_cast %10 : vector<1x1x1x8x16x4xbf16> to vector<8x16x4xbf16>
    %c0_32 = arith.constant 0 : index
    %c3_33 = arith.constant 3 : index
    %c0_34 = arith.constant 0 : index
    %c1_35 = arith.constant 1 : index
    %c0_36 = arith.constant 0 : index
    %c0_37 = arith.constant 0 : index
    %12 = vector.load %arg2[%c0_32, %c3_33, %c0_34, %c1_35, %c0_36, %c0_37] : memref<1x4x1x9x17x4xbf16, #tpu.memory_space<vmem>>, vector<1x1x1x8x16x4xbf16>
    %13 = vector.shape_cast %12 : vector<1x1x1x8x16x4xbf16> to vector<8x16x4xbf16>
    %c0_38 = arith.constant 0 : index
    %c2_39 = arith.constant 2 : index
    %c0_40 = arith.constant 0 : index
    %c1_41 = arith.constant 1 : index
    %c1_42 = arith.constant 1 : index
    %c0_43 = arith.constant 0 : index
    %14 = vector.load %arg2[%c0_38, %c2_39, %c0_40, %c1_41, %c1_42, %c0_43] : memref<1x4x1x9x17x4xbf16, #tpu.memory_space<vmem>>, vector<1x1x1x8x16x4xbf16>
    %15 = vector.shape_cast %14 : vector<1x1x1x8x16x4xbf16> to vector<8x16x4xbf16>
    %c0_44 = arith.constant 0 : index
    %c3_45 = arith.constant 3 : index
    %c0_46 = arith.constant 0 : index
    %c1_47 = arith.constant 1 : index
    %c1_48 = arith.constant 1 : index
    %c0_49 = arith.constant 0 : index
    %16 = vector.load %arg2[%c0_44, %c3_45, %c0_46, %c1_47, %c1_48, %c0_49] : memref<1x4x1x9x17x4xbf16, #tpu.memory_space<vmem>>, vector<1x1x1x8x16x4xbf16>
    %17 = vector.shape_cast %16 : vector<1x1x1x8x16x4xbf16> to vector<8x16x4xbf16>
    %18 = tpu.concatenate %1, %3, %5, %7, %9, %11, %13, %15, %17 in 2 : vector<8x16x4xbf16>, vector<8x16x4xbf16>, vector<8x16x4xbf16>, vector<8x16x4xbf16>, vector<8x16x4xbf16>, vector<8x16x4xbf16>, vector<8x16x4xbf16>, vector<8x16x4xbf16>, vector<8x16x4xbf16> -> vector<8x16x36xbf16>
    %19 = vector.shape_cast %18 : vector<8x16x36xbf16> to vector<128x36xbf16>
    %c0_50 = arith.constant 0 : index
    %c0_51 = arith.constant 0 : index
    %20 = vector.load %arg3[%c0_50, %c0_51] : memref<36x8xbf16, #tpu.memory_space<vmem>>, vector<36x8xbf16>
    %cst = arith.constant dense<0.000000e+00> : vector<128x8xf32>
    %21 = tpu.matmul %19, %20, %cst {dimension_numbers = #tpu.dot_dimension_numbers<[1], [0], [0], [1], [0, 0, 1, 1], [], []>} : vector<128x36xbf16>, vector<36x8xbf16>, vector<128x8xf32> -> vector<128x8xf32>
    %c0_52 = arith.constant 0 : index
    %c0_53 = arith.constant 0 : index
    %22 = vector.load %arg4[%c0_52, %c0_53] : memref<1x8xf32, #tpu.memory_space<vmem>>, vector<1x8xf32>
    %23 = vector.broadcast %22 : vector<1x8xf32> to vector<128x8xf32>
    %24 = arith.addf %21, %23 : vector<128x8xf32>
    %25 = vector.shape_cast %24 : vector<128x8xf32> to vector<8x16x8xf32>
    %c0_54 = arith.constant 0 : index
    %c0_55 = arith.constant 0 : index
    %c0_56 = arith.constant 0 : index
    %c0_57 = arith.constant 0 : index
    %26 = vector.load %arg5[%c0_54, %c0_55, %c0_56, %c0_57] : memref<1x8x16x8xf32, #tpu.memory_space<vmem>>, vector<1x8x16x8xf32>
    %27 = vector.shape_cast %26 : vector<1x8x16x8xf32> to vector<8x16x8xf32>
    %28 = vector.shape_cast %25 : vector<8x16x8xf32> to vector<1x8x16x8xf32>
    tpu.vector_store %arg5[%c0_54, %c0_55, %c0_56, %c0_57], %28 {strides = array<i32>} : memref<1x8x16x8xf32, #tpu.memory_space<vmem>>, vector<1x8x16x8xf32>,
    return
  }
  func.func @transform_0(%arg0: i32, %arg1: i32) -> (i32, i32, i32, i32, i32, i32) {
    %c0_i32 = arith.constant 0 : i32
    %c0_i32_0 = arith.constant 0 : i32
    %c0_i32_1 = arith.constant 0 : i32
    %c0_i32_2 = arith.constant 0 : i32
    %c0_i32_3 = arith.constant 0 : i32
    return %arg0, %c0_i32, %arg1, %c0_i32_0, %c0_i32_1, %c0_i32_2 : i32, i32, i32, i32, i32, i32
  }
  func.func @transform_1(%arg0: i32, %arg1: i32) -> (i32, i32) {
    %c0_i32 = arith.constant 0 : i32
    %c0_i32_0 = arith.constant 0 : i32
    %c0_i32_1 = arith.constant 0 : i32
    return %c0_i32, %c0_i32_0 : i32, i32
  }
  func.func @transform_2(%arg0: i32, %arg1: i32) -> (i32, i32) {
    %c0_i32 = arith.constant 0 : i32
    %c0_i32_0 = arith.constant 0 : i32
    %c0_i32_1 = arith.constant 0 : i32
    return %c0_i32, %c0_i32_0 : i32, i32
  }
  func.func @transform_3(%arg0: i32, %arg1: i32) -> (i32, i32, i32, i32) {
    %c0_i32 = arith.constant 0 : i32
    %c0_i32_0 = arith.constant 0 : i32
    %c0_i32_1 = arith.constant 0 : i32
    return %arg0, %arg1, %c0_i32, %c0_i32_0 : i32, i32, i32, i32
  }
}

</mosaic_0001>

<bundles_post_ra>
// kernel: _resample_down_impl.1
= control target key start
LH: loop header
LB: loop body
LE: loop exit
PB: predicated region body
PF: predicated region fallthrough
CT: control target
= control target key end

     0   :  { %s2837_s12 = smov 0   ;;  %s2839_s13 = smov 0   ;;  %s3474_s0 = inlined_call_operand.vmem [shape: bf16[2,4,2,9,17,4], index: 0, kind: input, shape index: {}]   ;;  %s3475_s1 = inlined_call_operand.vmem [shape: bf16[36,8], index: 1, kind: input, shape index: {}]   ;;  %s3476_s2 = inlined_call_operand.vmem [shape: f32[1,8], index: 2, kind: input, shape index: {}]   ;;  %s3477_s3 = inlined_call_operand.vmem [shape: f32[2,16,16,8], index: 3, kind: output, shape index: {}]  }
   0x1   :  { %s2841_s14 = smov 0   ;;  %s2843_s15 = smov 0  }
   0x2   :  { %s2845_s16 = smov 0   ;;  %s2847_s17 = smov 0  }
   0x3   :  { %s2849_s18 = smov 0  }
   0x4 LB: > { %s22_s19 = sadd.s32 1, %s2799_s16  ;;  %s25_s20 = sadd.s32 1, %s2803_s17  ;;  %s2807_s18 = sphi %s2849_s18, %s13_s18   ;;  %s2803_s17 = sphi %s2847_s17, %s3483_s17   ;;  %s2799_s16 = sphi %s2845_s16, %s3482_s16   ;;  %s2795_s15 = sphi %s2843_s15, %s3481_s15   ;;  %s2791_s14 = sphi %s2841_s14, %s3480_s14   ;;  %s2787_s13 = sphi %s2839_s13, %s3479_s13   ;;  %s2783_s12 = sphi %s2837_s12, %s3478_s12  }
   0x5   : > { %p23_p0 = scmp.ge.s32.totalorder %s22_s19, 2  ;;  %p41_p1 = scmp.ne.s32.totalorder %s2787_s13, %s2783_s12 }
   0x6   : > { %p42_p2 = scmp.eq.s32.totalorder %s2807_s18, 0  ;;  %s34_s24 = sadd.s32 1, %s2787_s13 }
   0x7   : > { %s3485_s19 = smov (%p23_p0, %s22_s19), 0  ;;  %s3487_s20 = smov (!%p23_p0, %s25_s20), %s2803_s17 }
   0x8   : > { %p43_p3 = por %p42_p2, %p41_p1  ;;  %p27_p4 = scmp.ge.s32.totalorder %s3487_s20, 2 }
   0x9   : > { %s30_s21 = ssub.s32 %s2799_s16, %s3485_s19  ;;  %p2260_p6 = scmp.ge.s32.totalorder %s2807_s18, 4 }
   0xa   : > { %s3489_s20 = smov (%p27_p4, %s3487_s20), 0 }
   0xb   : > { %s29_s22 = ssub.s32 %s2803_s17, %s3489_s20  ;;  %143 = sbr.rel (%p2260_p6) target bundleno = 81 (0x51), region = 24 }
   0xc   : > { %s31_s23 = sor.u32 %s30_s21, %s29_s22 }
   0xd   : > { %p32_p5 = scmp.eq.s32.totalorder %s31_s23, 0 }
   0xf   : > { %s2888_s25 = scalar_select %p32_p5, %s2787_s13, %s34_s24  }
  0x10   : > { %146 = sbr.rel (!%p43_p3) target bundleno = 81 (0x51), region = 28  ;;  %s148_s26 = sand.u32 (%p43_p3), 1, %s2787_s13  }
  0x11   : > { %s2681_s27 = smul.u32 (%p43_p3), 27, %s2799_s16 }
  0x12   : > { %s2680_s28 = smul.u32 (%p43_p3), 432, %s148_s26 }
  0x13   : > { %s2682_s29 = smul.u32 (%p43_p3), 216, %s2803_s17 }
  0x14   : > { %s2902_s8 = scalar_lea.vmem (%p43_p3), [#allocation2], %s2680_s28 }
  0x15   : > { %s153_s30 = sadd.s32 %s2682_s29, %s2681_s27 }
  0x16   : > { %s2261_s4 = sshll.u32 %s153_s30, 2 }
  0x17   : > { %s2897_s7 = scalar_lea.vmem %s3474_s0, %s2261_s4 }
  0x18   : > { %v172_v0 = vld [vmem:[%s2897_s7] sm:$0xff]   ;;  %v176_v1 = vld [vmem:[%s2897_s7 + $0x8] sm:$0xff]   ;;  %v180_v2 = vld [vmem:[%s2897_s7 + $0x10] sm:$0xff]  }
  0x19   : > { %173 = vst [vmem:[%s2902_s8] sm:$0xff] %v172_v0   ;;  %v184_v3 = vld [vmem:[%s2897_s7 + $0x18] sm:$0xff]   ;;  %v188_v4 = vld [vmem:[%s2897_s7 + $0x20] sm:$0xff]   ;;  %v192_v5 = vld [vmem:[%s2897_s7 + $0x28] sm:$0xff]  }
  0x1a   : > { %177 = vst [vmem:[%s2902_s8 + $0x8] sm:$0xff] %v176_v1   ;;  %v196_v6 = vld [vmem:[%s2897_s7 + $0x30] sm:$0xff]   ;;  %v200_v7 = vld [vmem:[%s2897_s7 + $0x38] sm:$0xff]   ;;  %v204_v8 = vld [vmem:[%s2897_s7 + $0x40] sm:$0xff]  }
  0x1b   : > { %181 = vst [vmem:[%s2902_s8 + $0x10] sm:$0xff] %v180_v2   ;;  %v208_v9 = vld [vmem:[%s2897_s7 + $0x48] sm:$0xff]   ;;  %v212_v10 = vld [vmem:[%s2897_s7 + $0x50] sm:$0xff]   ;;  %v216_v11 = vld [vmem:[%s2897_s7 + $0x58] sm:$0xff]  }
  0x1c   : > { %185 = vst [vmem:[%s2902_s8 + $0x18] sm:$0xff] %v184_v3   ;;  %v220_v12 = vld [vmem:[%s2897_s7 + $0x60] sm:$0xff]   ;;  %v224_v13 = vld [vmem:[%s2897_s7 + $0x68] sm:$0xf]  ;;  %v226_v14 = vld [vmem:[%s2897_s7 + $0xd8] sm:$0xff]  }
  0x1d   : > { %189 = vst [vmem:[%s2902_s8 + $0x20] sm:$0xff] %v188_v4   ;;  %v230_v15 = vld [vmem:[%s2897_s7 + $0xe0] sm:$0xff]   ;;  %v234_v16 = vld [vmem:[%s2897_s7 + $0xe8] sm:$0xff]   ;;  %v238_v17 = vld [vmem:[%s2897_s7 + $0xf0] sm:$0xff]  }
  0x1e   : > { %193 = vst [vmem:[%s2902_s8 + $0x28] sm:$0xff] %v192_v5   ;;  %v242_v18 = vld [vmem:[%s2897_s7 + $0xf8] sm:$0xff]   ;;  %v246_v19 = vld [vmem:[%s2897_s7 + $0x100] sm:$0xff]   ;;  %v250_v20 = vld [vmem:[%s2897_s7 + $0x108] sm:$0xff]  }
  0x1f   : > { %197 = vst [vmem:[%s2902_s8 + $0x30] sm:$0xff] %v196_v6   ;;  %v254_v21 = vld [vmem:[%s2897_s7 + $0x110] sm:$0xff]   ;;  %v258_v22 = vld [vmem:[%s2897_s7 + $0x118] sm:$0xff]   ;;  %v262_v23 = vld [vmem:[%s2897_s7 + $0x120] sm:$0xff]  }
  0x20   : > { %201 = vst [vmem:[%s2902_s8 + $0x38] sm:$0xff] %v200_v7   ;;  %v266_v24 = vld [vmem:[%s2897_s7 + $0x128] sm:$0xff]   ;;  %v270_v25 = vld [vmem:[%s2897_s7 + $0x130] sm:$0xff]   ;;  %v274_v26 = vld [vmem:[%s2897_s7 + $0x138] sm:$0xff]  }
  0x21   : > { %205 = vst [vmem:[%s2902_s8 + $0x40] sm:$0xff] %v204_v8   ;;  %v278_v27 = vld [vmem:[%s2897_s7 + $0x140] sm:$0xf]  ;;  %v280_v28 = vld [vmem:[%s2897_s7 + $0x1b0] sm:$0xff]   ;;  %v284_v29 = vld [vmem:[%s2897_s7 + $0x1b8] sm:$0xff]  }
  0x22   : > { %209 = vst [vmem:[%s2902_s8 + $0x48] sm:$0xff] %v208_v9   ;;  %v288_v30 = vld [vmem:[%s2897_s7 + $0x1c0] sm:$0xff]   ;;  %v292_v31 = vld [vmem:[%s2897_s7 + $0x1c8] sm:$0xff]   ;;  %v296_v32 = vld [vmem:[%s2897_s7 + $0x1d0] sm:$0xff]  }
  0x23   : > { %213 = vst [vmem:[%s2902_s8 + $0x50] sm:$0xff] %v212_v10   ;;  %v300_v33 = vld [vmem:[%s2897_s7 + $0x1d8] sm:$0xff]   ;;  %v304_v34 = vld [vmem:[%s2897_s7 + $0x1e0] sm:$0xff]   ;;  %v308_v35 = vld [vmem:[%s2897_s7 + $0x1e8] sm:$0xff]  }
  0x24   : > { %217 = vst [vmem:[%s2902_s8 + $0x58] sm:$0xff] %v216_v11   ;;  %v312_v36 = vld [vmem:[%s2897_s7 + $0x1f0] sm:$0xff]   ;;  %v316_v37 = vld [vmem:[%s2897_s7 + $0x1f8] sm:$0xff]   ;;  %v320_v38 = vld [vmem:[%s2897_s7 + $0x200] sm:$0xff]  }
  0x25   : > { %221 = vst [vmem:[%s2902_s8 + $0x60] sm:$0xff] %v220_v12   ;;  %v324_v39 = vld [vmem:[%s2897_s7 + $0x208] sm:$0xff]   ;;  %v328_v40 = vld [vmem:[%s2897_s7 + $0x210] sm:$0xff]   ;;  %v332_v41 = vld [vmem:[%s2897_s7 + $0x218] sm:$0xf] }
  0x26   : > { %225 = vst [vmem:[%s2902_s8 + $0x68] sm:$0xf] %v224_v13  ;;  %v334_v42 = vld [vmem:[%s2897_s7 + $0x288] sm:$0xff]   ;;  %v338_v43 = vld [vmem:[%s2897_s7 + $0x290] sm:$0xff]   ;;  %v342_v44 = vld [vmem:[%s2897_s7 + $0x298] sm:$0xff]  }
  0x27   : > { %227 = vst [vmem:[%s2902_s8 + $0x6c] sm:$0xff] %v226_v14   ;;  %v346_v45 = vld [vmem:[%s2897_s7 + $0x2a0] sm:$0xff]   ;;  %v350_v46 = vld [vmem:[%s2897_s7 + $0x2a8] sm:$0xff]   ;;  %v354_v47 = vld [vmem:[%s2897_s7 + $0x2b0] sm:$0xff]  }
  0x28   : > { %231 = vst [vmem:[%s2902_s8 + $0x74] sm:$0xff] %v230_v15   ;;  %v358_v48 = vld [vmem:[%s2897_s7 + $0x2b8] sm:$0xff]   ;;  %v362_v49 = vld [vmem:[%s2897_s7 + $0x2c0] sm:$0xff]   ;;  %v366_v50 = vld [vmem:[%s2897_s7 + $0x2c8] sm:$0xff]  }
  0x29   : > { %235 = vst [vmem:[%s2902_s8 + $0x7c] sm:$0xff] %v234_v16   ;;  %v370_v51 = vld [vmem:[%s2897_s7 + $0x2d0] sm:$0xff]   ;;  %v374_v52 = vld [vmem:[%s2897_s7 + $0x2d8] sm:$0xff]   ;;  %v378_v53 = vld [vmem:[%s2897_s7 + $0x2e0] sm:$0xff]  }
  0x2a   : > { %239 = vst [vmem:[%s2902_s8 + $0x84] sm:$0xff] %v238_v17   ;;  %v382_v54 = vld [vmem:[%s2897_s7 + $0x2e8] sm:$0xff]   ;;  %v386_v55 = vld [vmem:[%s2897_s7 + $0x2f0] sm:$0xf] }
  0x2b   : > { %243 = vst [vmem:[%s2902_s8 + $0x8c] sm:$0xff] %v242_v18  }
  0x2c   : > { %247 = vst [vmem:[%s2902_s8 + $0x94] sm:$0xff] %v246_v19  }
  0x2d   : > { %251 = vst [vmem:[%s2902_s8 + $0x9c] sm:$0xff] %v250_v20  }
  0x2e   : > { %255 = vst [vmem:[%s2902_s8 + $0xa4] sm:$0xff] %v254_v21  }
  0x2f   : > { %259 = vst [vmem:[%s2902_s8 + $0xac] sm:$0xff] %v258_v22  }
  0x30   : > { %263 = vst [vmem:[%s2902_s8 + $0xb4] sm:$0xff] %v262_v23  }
  0x31   : > { %267 = vst [vmem:[%s2902_s8 + $0xbc] sm:$0xff] %v266_v24  }
  0x32   : > { %271 = vst [vmem:[%s2902_s8 + $0xc4] sm:$0xff] %v270_v25  }
  0x33   : > { %275 = vst [vmem:[%s2902_s8 + $0xcc] sm:$0xff] %v274_v26  }
  0x34   : > { %279 = vst [vmem:[%s2902_s8 + $0xd4] sm:$0xf] %v278_v27 }
  0x35   : > { %281 = vst [vmem:[%s2902_s8 + $0xd8] sm:$0xff] %v280_v28  }
  0x36   : > { %285 = vst [vmem:[%s2902_s8 + $0xe0] sm:$0xff] %v284_v29  }
  0x37   : > { %289 = vst [vmem:[%s2902_s8 + $0xe8] sm:$0xff] %v288_v30  }
  0x38   : > { %293 = vst [vmem:[%s2902_s8 + $0xf0] sm:$0xff] %v292_v31  }
  0x39   : > { %297 = vst [vmem:[%s2902_s8 + $0xf8] sm:$0xff] %v296_v32  }
  0x3a   : > { %301 = vst [vmem:[%s2902_s8 + $0x100] sm:$0xff] %v300_v33  }
  0x3b   : > { %305 = vst [vmem:[%s2902_s8 + $0x108] sm:$0xff] %v304_v34  }
  0x3c   : > { %309 = vst [vmem:[%s2902_s8 + $0x110] sm:$0xff] %v308_v35  }
  0x3d   : > { %313 = vst [vmem:[%s2902_s8 + $0x118] sm:$0xff] %v312_v36  }
  0x3e   : > { %317 = vst [vmem:[%s2902_s8 + $0x120] sm:$0xff] %v316_v37  }
  0x3f   : > { %321 = vst [vmem:[%s2902_s8 + $0x128] sm:$0xff] %v320_v38  }
  0x40   : > { %325 = vst [vmem:[%s2902_s8 + $0x130] sm:$0xff] %v324_v39  }
  0x41   : > { %329 = vst [vmem:[%s2902_s8 + $0x138] sm:$0xff] %v328_v40  }
  0x42   : > { %333 = vst [vmem:[%s2902_s8 + $0x140] sm:$0xf] %v332_v41 }
  0x43   : > { %335 = vst [vmem:[%s2902_s8 + $0x144] sm:$0xff] %v334_v42  }
  0x44   : > { %339 = vst [vmem:[%s2902_s8 + $0x14c] sm:$0xff] %v338_v43  }
  0x45   : > { %343 = vst [vmem:[%s2902_s8 + $0x154] sm:$0xff] %v342_v44  }
  0x46   : > { %347 = vst [vmem:[%s2902_s8 + $0x15c] sm:$0xff] %v346_v45  }
  0x47   : > { %351 = vst [vmem:[%s2902_s8 + $0x164] sm:$0xff] %v350_v46  }
  0x48   : > { %355 = vst [vmem:[%s2902_s8 + $0x16c] sm:$0xff] %v354_v47  }
  0x49   : > { %359 = vst [vmem:[%s2902_s8 + $0x174] sm:$0xff] %v358_v48  }
  0x4a   : > { %363 = vst [vmem:[%s2902_s8 + $0x17c] sm:$0xff] %v362_v49  }
  0x4b   : > { %367 = vst [vmem:[%s2902_s8 + $0x184] sm:$0xff] %v366_v50  }
  0x4c   : > { %371 = vst [vmem:[%s2902_s8 + $0x18c] sm:$0xff] %v370_v51  }
  0x4d   : > { %375 = vst [vmem:[%s2902_s8 + $0x194] sm:$0xff] %v374_v52  }
  0x4e   : > { %379 = vst [vmem:[%s2902_s8 + $0x19c] sm:$0xff] %v378_v53  }
  0x4f   : > { %383 = vst [vmem:[%s2902_s8 + $0x1a4] sm:$0xff] %v382_v54  }
  0x50   : > { %387 = vst [vmem:[%s2902_s8 + $0x1ac] sm:$0xf] %v386_v55 }
  0x51 PF: > { %p2262_p7 = scmp.ge.s32.totalorder %s2807_s18, 1  ;;  %p626_p8 = scmp.lt.s32.totalorder %s2807_s18, 5 }
  0x53   : > { %p627_p9 = pnand %p2262_p7, %p626_p8 }
  0x54   : > { %s633_s9 = sand.u32 (!%p627_p9), 1, %s2783_s12   ;;  %s2809_s12 = smov (!%p627_p9), 12  }
  0x55   : > { %630 = sbr.rel (%p627_p9) target bundleno = 521 (0x209), region = 69  ;;  %s2810_s21 = smov (!%p627_p9), 4  }
  0x56   : > { %s2683_s10 = smul.u32 (!%p627_p9), 432, %s633_s9  ;;  %s2811_s22 = smov (!%p627_p9), 8  }
  0x57   : > { %s2812_s23 = smov (!%p627_p9), 16   ;;  %s2813_s24 = smov (!%p627_p9), 20  }
  0x58   : > { %s3016_s11 = scalar_lea.vmem (!%p627_p9), [#allocation2], %s2683_s10  ;;  %s2814_s26 = smov (!%p627_p9), 24  }
  0x59   : > { %s2815_s27 = smov (!%p627_p9), 28   ;;  %s2816_s28 = smov (!%p627_p9), 32  }
  0x5a   : > { %v2633_v56 = vld [vmem:[%s3016_s11 + $0x108] sm:$0xff]  ;;  %v2297_v57 = vld [vmem:[%s3016_s11 + $0x110] sm:$0x1]  ;;  %v2625_v58 = vld [vmem:[%s3016_s11 + $0x174] sm:$0xff]  ;;  %vm927_vm0 = vsmask.f32 7424 }
  0x5b   : > { %v901_v59 = vunpack.c.l.b16 %v2297_v57  ;;  %v2311_v60 = vld [vmem:[%s3016_s11 + $0x17c] sm:$0x1]  ;;  %v2635_v61 = vld [vmem:[%s3016_s11 + $0x120] sm:$0xff]  ;;  %v2303_v62 = vld [vmem:[%s3016_s11 + $0x128] sm:$0x1]  ;;  %v977_v63 = vshrl.u32 %v2633_v56, 16 }
  0x5c   : > { %v979_v0 = vshll.u32 %v2633_v56, 16  ;;  %v1052_v1 = vunpack.c.l.b16 %v2311_v60  ;;  %v2313_v2 = vld [vmem:[%s3016_s11 + $0x194] sm:$0x1]  ;;  %v1113_v4 = vshrl.u32 %v2625_v58, 16  ;;  %v1115_v5 = vshll.u32 %v2625_v58, 16  ;;  %v2627_v7 = vld [vmem:[%s3016_s11 + $0x18c] sm:$0xff] }
  0x5d   : > { %v920_v3 = vpack.c.b16 %v901_v59, %v901_v59  ;;  %v907_v6 = vunpack.c.l.b16 %v2303_v62  ;;  %v1003_v10 = vshll.u32 %v2635_v61, 16  ;;  %v1054_v11 = vunpack.c.l.b16 %v2313_v2  ;;  %v3027_v12 = vld [vmem:[%s3016_s11 + $0xa8] sm:$0xff]  ;;  %v2345_v17 = vld [vmem:[%s3016_s11 + $0x44] sm:$0x1]  ;;  %v2649_v26 = vld [vmem:[%s3016_s11 + $0x3c] sm:$0xff]  ;;  %s2263_s8 = sshll.u32 %s2791_s14, 3 }
  0x5e   : > { %v981_v8 = vrot.slane %v979_v0, 1  ;;  %v1060_v9 = vpack.c.b16 %v1052_v1, %v1052_v1  ;;  %v1117_v14 = vrot.slane %v1115_v5, 1  ;;  %v1001_v16 = vshrl.u32 %v2635_v61, 16  ;;  %1224 = vrot.lane.b32.xlu2 %v3027_v12, %s2809_s12  ;;  %v2651_v31 = vld [vmem:[%s3016_s11 + $0x54] sm:$0xff]  ;;  %v2351_v32 = vld [vmem:[%s3016_s11 + $0x5c] sm:$0x1] }
  0x5f   : > { %v984_v13 = vshll.u32 %v920_v3, 16  ;;  %v924_v15 = vpack.c.b16 %v907_v6, %v907_v6  ;;  %v1005_v20 = vrot.slane %v1003_v10, 1  ;;  %v1062_v21 = vpack.c.b16 %v1054_v11, %v1054_v11  ;;  %v2643_v44 = vld [vmem:[%s3016_s11 + $0xc0] sm:$0xff]  ;;  %v2361_v45 = vld [vmem:[%s3016_s11 + $0xc8] sm:$0x1]  ;;  %v2629_v3 = vld [vmem:[%s3016_s11 + $0xd8] sm:$0xff] }
  0x60   : > { %v982_v18 = vor.u32 %v981_v8, %v977_v63  ;;  %v1120_v19 = vshll.u32 %v1060_v9, 16  ;;  %v1118_v23 = vor.u32 %v1117_v14, %v1113_v4  ;;  %v1139_v25 = vshll.u32 %v2627_v7, 16  ;;  %v2359_v57 = vld [vmem:[%s3016_s11 + $0xb0] sm:$0x1]  ;;  %v2285_v58 = vld [vmem:[%s3016_s11 + $0xe0] sm:$0x1] }
  0x61   : > { %v986_v22 = vrot.slane %v984_v13, 1  ;;  %v1008_v24 = vshll.u32 %v924_v15, 16  ;;  %v1137_v28 = vshrl.u32 %v2627_v7, 16  ;;  %v1144_v29 = vshll.u32 %v1062_v21, 16  ;;  %v2291_v5 = vld [vmem:[%s3016_s11 + $0xf8] sm:$0x1] }
  0x62   : > { %v1122_v27 = vrot.slane %v1120_v19, 1  ;;  %v1270_v30 = vunpack.c.l.b16 %v2345_v17  ;;  %v1141_v34 = vrot.slane %v1139_v25, 1  ;;  %v1006_v36 = vor.u32 %v1005_v20, %v1001_v16  ;;  %v2631_v14 = vld [vmem:[%s3016_s11 + $0xf0] sm:$0xff]  ;;  %p662_p10 = scmp.lt.s32.totalorder %s2795_s15, 1  ;;  %p664_p11 = scmp.lt.s32.totalorder %s2263_s8, 15 }
  0x63   : > { %v987_v33 = vsel %vm927_vm0, %v982_v18, %v986_v22  ;;  %v1010_v37 = vrot.slane %v1008_v24, 1  ;;  %v1347_v39 = vshll.u32 %v2649_v26, 16  ;;  %v1276_v40 = vunpack.c.l.b16 %v2351_v32  ;;  %v2399_v25 = vld [vmem:[%s3016_s11 + $0x134] sm:$0x1] }
  0x64   : > { %1032 = vrot.lane.b32.xlu0 %v987_v33, %s2810_s21  ;;  %v1123_v35 = vsel %vm927_vm0, %v1118_v23, %v1122_v27  ;;  %v1289_v38 = vpack.c.b16 %v1270_v30, %v1270_v30  ;;  %v1142_v41 = vor.u32 %v1141_v34, %v1137_v28  ;;  %v1146_v42 = vrot.slane %v1144_v29, 1  ;;  %v2393_v27 = vld [vmem:[%s3016_s11 + $0x11c] sm:$0x1]  ;;  %v3065_v33 = vld [vmem:[%s3016_s11 + $0x180] sm:$0xff]  ;;  %s3491_s15 = smov (!%p662_p10, %s2795_s15), 1  ;;  %s3493_s8 = smov (!%p664_p11, %s2263_s8), 15 }
  0x65   : > { %1168 = vrot.lane.b32.xlu1 %v1123_v35, %s2811_s22  ;;  %v1371_v43 = vshll.u32 %v2651_v31, 16  ;;  %v1293_v46 = vpack.c.b16 %v1276_v40, %v1276_v40  ;;  %v1345_v47 = vshrl.u32 %v2649_v26, 16  ;;  %v1011_v48 = vsel %vm927_vm0, %v1006_v36, %v1010_v37  ;;  %v2665_v26 = vld [vmem:[%s3016_s11 + $0x114] sm:$0xff]  ;;  %v2667_v35 = vld [vmem:[%s3016_s11 + $0x12c] sm:$0xff]  ;;  %s2264_s14 = sshll.u32 %s3493_s8, 1  ;;  %s2265_s9 = sshll.u32 %s3491_s15, 5 }
  0x66   : > { %1228 = vrot.lane.b32.xlu2 %v2643_v44, %s2809_s12  ;;  %v1349_v49 = vrot.slane %v1347_v39, 1  ;;  %v1352_v50 = vshll.u32 %v1289_v38, 16  ;;  %v1422_v51 = vunpack.c.l.b16 %v2361_v45  ;;  %v1147_v52 = vsel %vm927_vm0, %v1142_v41, %v1146_v42  ;;  %v2309_v38 = vld [vmem:[%s3016_s11 + $0x164] sm:$0x1]  ;;  %s668_s10 = sadd.s32 %s2265_s9, %s2264_s14 }
  0x67   : > { %v1369_v53 = vshrl.u32 %v2651_v31, 16  ;;  %v1373_v54 = vrot.slane %v1371_v43, 1  ;;  %v1376_v55 = vshll.u32 %v1293_v46, 16  ;;  %v1483_v56 = vshll.u32 %v3027_v12, 16  ;;  %v2307_v31 = vld [vmem:[%s3016_s11 + $0x14c] sm:$0x1] }
  0x68   : > { %v1350_v59 = vor.u32 %v1349_v49, %v1345_v47  ;;  %v1354_v60 = vrot.slane %v1352_v50, 1  ;;  %v1430_v61 = vpack.c.b16 %v1422_v51, %v1422_v51  ;;  %v1507_v62 = vshll.u32 %v2643_v44, 16  ;;  %v2621_v41 = vld [vmem:[%s3016_s11 + $0x144] sm:$0xff]  ;;  %v3071_v46 = vld [vmem:[%s3016_s11 + $0x198] sm:$0xff] }
  0x69   : > { %v1374_v63 = vor.u32 %v1373_v54, %v1369_v53  ;;  %v1378_v0 = vrot.slane %v1376_v55, 1  ;;  %v1420_v1 = vunpack.c.l.b16 %v2359_v57  ;;  %v1481_v2 = vshrl.u32 %v3027_v12, 16  ;;  %v2623_v50 = vld [vmem:[%s3016_s11 + $0x15c] sm:$0xff] }
  0x6a   : > { %v889_v4 = vunpack.c.l.b16 %v2285_v58  ;;  %v1485_v6 = vrot.slane %v1483_v56, 1  ;;  %v1355_v8 = vsel %vm927_vm0, %v1350_v59, %v1354_v60  ;;  %v1505_v9 = vshrl.u32 %v2643_v44, 16  ;;  %v2407_v59 = vld [vmem:[%s3016_s11 + $0x188] sm:$0x1] }
  0x6b   : > { %v1428_v7 = vpack.c.b16 %v1420_v1, %v1420_v1  ;;  %v1509_v10 = vrot.slane %v1507_v62, 1  ;;  %v1512_v11 = vshll.u32 %v1430_v61, 16  ;;  %v1379_v13 = vsel %vm927_vm0, %v1374_v63, %v1378_v0  ;;  %v2409_v62 = vld [vmem:[%s3016_s11 + $0x1a0] sm:$0x1] }
  0x6c   : > { %1036 = vrot.lane.b32.xlu0 %v1011_v48, %s2810_s21  ;;  %v895_v15 = vunpack.c.l.b16 %v2291_v5  ;;  %v1486_v16 = vor.u32 %v1485_v6, %v1481_v2  ;;  %v912_v12 = vpack.c.b16 %v889_v4, %v889_v4  ;;  %v931_v18 = vshll.u32 %v2629_v3, 16 }
  0x6d   : > { %1172 = vrot.lane.b32.xlu1 %v1147_v52, %s2811_s22  ;;  %v1488_v17 = vshll.u32 %v1428_v7, 16  ;;  %v1510_v20 = vor.u32 %v1509_v10, %v1505_v9  ;;  %v1514_v21 = vrot.slane %v1512_v11, 1  ;;  %v955_v23 = vshll.u32 %v2631_v14, 16 }
  0x6e   : > { %v916_v22 = vpack.c.b16 %v895_v15, %v895_v15  ;;  %v929_v28 = vshrl.u32 %v2629_v3, 16  ;;  %v933_v29 = vrot.slane %v931_v18, 1  ;;  %v936_v30 = vshll.u32 %v912_v12, 16 }
  0x6f   : > { %v1490_v19 = vrot.slane %v1488_v17, 1  ;;  %v1515_v32 = vsel %vm927_vm0, %v1510_v20, %v1514_v21  ;;  %v953_v34 = vshrl.u32 %v2631_v14, 16  ;;  %v1644_v36 = vunpack.c.l.b16 %v2399_v25 }
  0x70   : > { %v1638_v37 = vunpack.c.l.b16 %v2393_v27  ;;  %v957_v39 = vrot.slane %v955_v23, 1  ;;  %v960_v40 = vshll.u32 %v916_v22, 16  ;;  %v1048_v42 = vunpack.c.l.b16 %v2307_v31  ;;  %v2333_v23 = vld [vmem:[%s3016_s11 + $0x14] sm:$0x1]  ;;  %v2339_v31 = vld [vmem:[%s3016_s11 + $0x2c] sm:$0x1] }
  0x71   : > { %v1491_v24 = vsel %vm927_vm0, %v1486_v16, %v1490_v19  ;;  %v1715_v43 = vshll.u32 %v2665_v26, 16  ;;  %v934_v44 = vor.u32 %v933_v29, %v929_v28  ;;  %v938_v45 = vrot.slane %v936_v30, 1 }
  0x72   : > { %1536 = vrot.lane.b32.xlu2 %v1491_v24, %s2813_s24  ;;  %v1657_v47 = vpack.c.b16 %v1638_v37, %v1638_v37  ;;  %v1713_v48 = vshrl.u32 %v2665_v26, 16  ;;  %v1050_v51 = vunpack.c.l.b16 %v2309_v38  ;;  %v1661_v52 = vpack.c.b16 %v1644_v36, %v1644_v36  ;;  %v2645_v36 = vld [vmem:[%s3016_s11 + $0xc] sm:$0xff]  ;;  %v2647_v38 = vld [vmem:[%s3016_s11 + $0x24] sm:$0xff] }
  0x73   : > { %v1717_v49 = vrot.slane %v1715_v43, 1  ;;  %v1739_v53 = vshll.u32 %v2667_v35, 16  ;;  %v958_v55 = vor.u32 %v957_v39, %v953_v34  ;;  %v962_v56 = vrot.slane %v960_v40, 1 }
  0x74   : > { %1400 = vrot.lane.b32.xlu0 %v1355_v8, %s2812_s23  ;;  %v1720_v54 = vshll.u32 %v1657_v47, 16  ;;  %v1056_v57 = vpack.c.b16 %v1048_v42, %v1048_v42  ;;  %v1067_v58 = vshll.u32 %v2621_v41, 16  ;;  %v939_v60 = vsel %vm927_vm0, %v934_v44, %v938_v45  ;;  %v2357_v47 = vld [vmem:[%s3016_s11 + $0x98] sm:$0x1] }
  0x75   : > { %1404 = vrot.lane.b32.xlu1 %v1379_v13, %s2812_s23  ;;  %v1737_v61 = vshrl.u32 %v2667_v35, 16  ;;  %v1718_v63 = vor.u32 %v1717_v49, %v1713_v48  ;;  %v1058_v1 = vpack.c.b16 %v1050_v51, %v1050_v51  ;;  %v1091_v2 = vshll.u32 %v2623_v50, 16 }
  0x76   : > { %v1722_v0 = vrot.slane %v1720_v54, 1  ;;  %v1741_v3 = vrot.slane %v1739_v53, 1  ;;  %v1744_v4 = vshll.u32 %v1661_v52, 16  ;;  %v1065_v5 = vshrl.u32 %v2621_v41, 16  ;;  %v2637_v52 = vld [vmem:[%s3016_s11 + $0x78] sm:$0xff] }
  0x77   : > { %v1788_v6 = vunpack.c.l.b16 %v2407_v59  ;;  %v963_v7 = vsel %vm927_vm0, %v958_v55, %v962_v56  ;;  %v1069_v8 = vrot.slane %v1067_v58, 1  ;;  %v1072_v9 = vshll.u32 %v1056_v57, 16  ;;  %v2639_v55 = vld [vmem:[%s3016_s11 + $0x90] sm:$0xff] }
  0x78   : > { %v1790_v10 = vunpack.c.l.b16 %v2409_v62  ;;  %v1723_v11 = vsel %vm927_vm0, %v1718_v63, %v1722_v0  ;;  %v1089_v13 = vshrl.u32 %v2623_v50, 16  ;;  %v1093_v14 = vrot.slane %v1091_v2, 1  ;;  %v2381_v0 = vld [vmem:[%s3016_s11 + $0xec] sm:$0x1] }
  0x79   : > { %v1096_v15 = vshll.u32 %v1058_v1, 16  ;;  %v1851_v16 = vshll.u32 %v3065_v33, 16  ;;  %v1742_v17 = vor.u32 %v1741_v3, %v1737_v61  ;;  %v1746_v12 = vrot.slane %v1744_v4, 1 }
  0x7a   : > { %1596 = vrot.lane.b32.xlu2 %v3071_v46, %s2814_s26  ;;  %v1796_v18 = vpack.c.b16 %v1788_v6, %v1788_v6  ;;  %v1070_v19 = vor.u32 %v1069_v8, %v1065_v5  ;;  %v1074_v20 = vrot.slane %v1072_v9, 1  ;;  %v1875_v21 = vshll.u32 %v3071_v46, 16  ;;  %v2661_v5 = vld [vmem:[%s3016_s11 + $0xe4] sm:$0xff] }
  0x7b   : > { %v1798_v22 = vpack.c.b16 %v1790_v10, %v1790_v10  ;;  %v1849_v24 = vshrl.u32 %v3065_v33, 16  ;;  %v1094_v25 = vor.u32 %v1093_v14, %v1089_v13  ;;  %v1098_v26 = vrot.slane %v1096_v15, 1  ;;  %v2387_v9 = vld [vmem:[%s3016_s11 + $0x104] sm:$0x1] }
  0x7c   : > { %1540 = vrot.lane.b32.xlu0 %v1515_v32, %s2813_s24  ;;  %v1747_v27 = vsel %vm927_vm0, %v1742_v17, %v1746_v12  ;;  %v1853_v28 = vrot.slane %v1851_v16, 1  ;;  %v1856_v29 = vshll.u32 %v1796_v18, 16  ;;  %v1873_v30 = vshrl.u32 %v3071_v46, 16  ;;  %v2355_v46 = vld [vmem:[%s3016_s11 + $0x80] sm:$0x1] }
  0x7d   : > { %1592 = vrot.lane.b32.xlu1 %v3065_v33, %s2814_s26  ;;  %v1075_v32 = vsel %vm927_vm0, %v1070_v19, %v1074_v20  ;;  %v1877_v34 = vrot.slane %v1875_v21, 1  ;;  %v1880_v35 = vshll.u32 %v1798_v22, 16  ;;  %v1258_v37 = vunpack.c.l.b16 %v2333_v23  ;;  %v2663_v12 = vld [vmem:[%s3016_s11 + $0xfc] sm:$0xff] }
  0x7e   : > { %v1099_v33 = vsel %vm927_vm0, %v1094_v25, %v1098_v26  ;;  %v1264_v39 = vunpack.c.l.b16 %v2339_v31  ;;  %v1854_v40 = vor.u32 %v1853_v28, %v1849_v24  ;;  %v1858_v41 = vrot.slane %v1856_v29, 1  ;;  %v2403_v26 = vld [vmem:[%s3016_s11 + $0x158] sm:$0x1] }
  0x7f   : > { %v1878_v42 = vor.u32 %v1877_v34, %v1873_v30  ;;  %v1882_v43 = vrot.slane %v1880_v35, 1  ;;  %v1281_v44 = vpack.c.b16 %v1258_v37, %v1258_v37  ;;  %v1299_v45 = vshll.u32 %v2645_v36, 16  ;;  %v2653_v35 = vld [vmem:[%s3016_s11 + $0x150] sm:$0xff]  ;;  %v2300_v37 = vld [vmem:[%s3016_s11 + $0x11c] sm:$0x1] }
  0x80   : > { %v1285_v48 = vpack.c.b16 %v1264_v39, %v1264_v39  ;;  %v1323_v49 = vshll.u32 %v2647_v38, 16  ;;  %v1859_v50 = vsel %vm927_vm0, %v1854_v40, %v1858_v41  ;;  %v1297_v51 = vshrl.u32 %v2645_v36, 16 }
  0x81   : > { %v1416_v53 = vunpack.c.l.b16 %v2355_v46  ;;  %v1883_v54 = vsel %vm927_vm0, %v1878_v42, %v1882_v43  ;;  %v1301_v56 = vrot.slane %v1299_v45, 1  ;;  %v1304_v57 = vshll.u32 %v1281_v44, 16  ;;  %v2634_v45 = vld [vmem:[%s3016_s11 + $0x114] sm:$0xff] }
  0x82   : > { %1768 = vrot.lane.b32.xlu2 %v1723_v11, %s2815_s27  ;;  %v1418_v58 = vunpack.c.l.b16 %v2357_v47  ;;  %v1321_v59 = vshrl.u32 %v2647_v38, 16  ;;  %v1328_v61 = vshll.u32 %v1285_v48, 16  ;;  %v1435_v63 = vshll.u32 %v2637_v52, 16  ;;  %v2655_v38 = vld [vmem:[%s3016_s11 + $0x168] sm:$0xff] }
  0x83   : > { %v1424_v62 = vpack.c.b16 %v1416_v53, %v1416_v53  ;;  %v1459_v1 = vshll.u32 %v2639_v55, 16  ;;  %v1302_v2 = vor.u32 %v1301_v56, %v1297_v51  ;;  %v1306_v3 = vrot.slane %v1304_v57, 1  ;;  %v2306_v51 = vld [vmem:[%s3016_s11 + $0x134] sm:$0x1] }
  0x84   : > { %1024 = vrot.lane.b32.xlu0 %v939_v60, %s2810_s21  ;;  %v1325_v60 = vrot.slane %v1323_v49, 1  ;;  %v1426_v4 = vpack.c.b16 %v1418_v58, %v1418_v58  ;;  %v1626_v6 = vunpack.c.l.b16 %v2381_v0  ;;  %v1330_v8 = vrot.slane %v1328_v61, 1  ;;  %v2636_v61 = vld [vmem:[%s3016_s11 + $0x12c] sm:$0xff] }
  0x85   : > { %1028 = vrot.lane.b32.xlu1 %v963_v7, %s2810_s21  ;;  %v1433_v10 = vshrl.u32 %v2637_v52, 16  ;;  %v1437_v11 = vrot.slane %v1435_v63, 1  ;;  %v1440_v13 = vshll.u32 %v1424_v62, 16  ;;  %v1307_v14 = vsel %vm927_vm0, %v1302_v2, %v1306_v3  ;;  %v2314_v63 = vld [vmem:[%s3016_s11 + $0x1a0] sm:$0x1] }
  0x86   : > { %v1326_v7 = vor.u32 %v1325_v60, %v1321_v59  ;;  %v1457_v15 = vshrl.u32 %v2639_v55, 16  ;;  %v1461_v16 = vrot.slane %v1459_v1, 1  ;;  %v1464_v17 = vshll.u32 %v1426_v4, 16  ;;  %v3136_v3 = vld [vmem:[%s3016_s11 + $0x180] sm:$0xff] }
  0x87   : > { %v1632_v18 = vunpack.c.l.b16 %v2387_v9  ;;  %v1649_v19 = vpack.c.b16 %v1626_v6, %v1626_v6  ;;  %v1667_v20 = vshll.u32 %v2661_v5, 16  ;;  %v1438_v22 = vor.u32 %v1437_v11, %v1433_v10  ;;  %v3141_v9 = vld [vmem:[%s3016_s11 + $0x198] sm:$0xff] }
  0x88   : > { %v1331_v21 = vsel %vm927_vm0, %v1326_v7, %v1330_v8  ;;  %v1442_v23 = vrot.slane %v1440_v13, 1  ;;  %v1462_v24 = vor.u32 %v1461_v16, %v1457_v15  ;;  %v1466_v25 = vrot.slane %v1464_v17, 1 }
  0x89   : > { %v1653_v28 = vpack.c.b16 %v1632_v18, %v1632_v18  ;;  %v1691_v29 = vshll.u32 %v2663_v12, 16  ;;  %v1665_v30 = vshrl.u32 %v2661_v5, 16  ;;  %v1669_v31 = vrot.slane %v1667_v20, 1 }
  0x8a   : > { %1164 = vrot.lane.b32.xlu2 %v1099_v33, %s2811_s22  ;;  %v1443_v34 = vsel %vm927_vm0, %v1438_v22, %v1442_v23  ;;  %v1784_v36 = vunpack.c.l.b16 %v2403_v26  ;;  %v1467_v33 = vsel %vm927_vm0, %v1462_v24, %v1466_v25  ;;  %v1689_v40 = vshrl.u32 %v2663_v12, 16  ;;  %v2348_v23 = vld [vmem:[%s3016_s11 + $0x50] sm:$0x1] }
  0x8b   : > { %v1693_v41 = vrot.slane %v1691_v29, 1  ;;  %v1696_v42 = vshll.u32 %v1653_v28, 16  ;;  %v1670_v43 = vor.u32 %v1669_v31, %v1665_v30  ;;  %v904_v46 = vunpack.c.l.b16 %v2300_v37 }
  0x8c   : > { %1772 = vrot.lane.b32.xlu0 %v1747_v27, %s2815_s27  ;;  %v2405_v27 = vld [vmem:[%s3016_s11 + $0x170] sm:$0x1]  ;;  %v1792_v47 = vpack.c.b16 %v1784_v36, %v1784_v36  ;;  %v1803_v48 = vshll.u32 %v2653_v35, 16  ;;  %v1827_v49 = vshll.u32 %v2655_v38, 16  ;;  %v991_v57 = vshll.u32 %v2634_v45, 16 }
  0x8d   : > { %1160 = vrot.lane.b32.xlu1 %v1075_v32, %s2811_s22  ;;  %v1672_v32 = vshll.u32 %v1649_v19, 16  ;;  %v1786_v39 = vunpack.c.l.b16 %v2405_v27  ;;  %v1694_v53 = vor.u32 %v1693_v41, %v1689_v40  ;;  %v922_v56 = vpack.c.b16 %v904_v46, %v904_v46 }
  0x8e   : > { %v1801_v58 = vshrl.u32 %v2653_v35, 16  ;;  %v1805_v59 = vrot.slane %v1803_v48, 1  ;;  %v1808_v60 = vshll.u32 %v1792_v47, 16  ;;  %v910_v62 = vunpack.c.l.b16 %v2306_v51  ;;  %v2362_v51 = vld [vmem:[%s3016_s11 + $0xd4] sm:$0x1] }
  0x8f   : > { %v1674_v44 = vrot.slane %v1672_v32, 1  ;;  %v1825_v0 = vshrl.u32 %v2655_v38, 16  ;;  %v1829_v1 = vrot.slane %v1827_v49, 1  ;;  %v989_v6 = vshrl.u32 %v2634_v45, 16  ;;  %v2650_v32 = vld [vmem:[%s3016_s11 + $0x48] sm:$0xff]  ;;  %v2652_v49 = vld [vmem:[%s3016_s11 + $0x60] sm:$0xff] }
  0x90   : > { %v993_v7 = vrot.slane %v991_v57, 1  ;;  %v996_v8 = vshll.u32 %v922_v56, 16  ;;  %v1055_v10 = vunpack.c.l.b16 %v2314_v63  ;;  %v1806_v11 = vor.u32 %v1805_v59, %v1801_v58 }
  0x91   : > { %v1810_v13 = vrot.slane %v1808_v60, 1  ;;  %v1015_v15 = vshll.u32 %v2636_v61, 16  ;;  %v1830_v16 = vor.u32 %v1829_v1, %v1825_v0  ;;  %v1127_v18 = vshll.u32 %v3136_v3, 16  ;;  %v2644_v0 = vld [vmem:[%s3016_s11 + $0xcc] sm:$0xff] }
  0x92   : > { %1216 = vrot.lane.b32.xlu2 %v2637_v52, %s2809_s12  ;;  %v2312_v52 = vld [vmem:[%s3016_s11 + $0x188] sm:$0x1]  ;;  %v994_v19 = vor.u32 %v993_v7, %v989_v6  ;;  %v998_v20 = vrot.slane %v996_v8, 1  ;;  %v1151_v22 = vshll.u32 %v3141_v9, 16  ;;  %v1013_v25 = vshrl.u32 %v2636_v61, 16 }
  0x93   : > { %v1053_v4 = vunpack.c.l.b16 %v2312_v52  ;;  %v1811_v24 = vsel %vm927_vm0, %v1806_v11, %v1810_v13  ;;  %v1017_v26 = vrot.slane %v1015_v15, 1  ;;  %v1125_v29 = vshrl.u32 %v3136_v3, 16  ;;  %v2288_v11 = vld [vmem:[%s3016_s11 + $0xec] sm:$0x1] }
  0x94   : > { %1904 = vrot.lane.b32.xlu0 %v1859_v50, %s2816_s28  ;;  %v1794_v50 = vpack.c.b16 %v1786_v39, %v1786_v39  ;;  %v1129_v30 = vrot.slane %v1127_v18, 1  ;;  %v1149_v36 = vshrl.u32 %v3141_v9, 16  ;;  %v1153_v37 = vrot.slane %v1151_v22, 1 }
  0x95   : > { %1908 = vrot.lane.b32.xlu1 %v1883_v54, %s2816_s28  ;;  %v1698_v54 = vrot.slane %v1696_v42, 1  ;;  %v1061_v12 = vpack.c.b16 %v1053_v4, %v1053_v4  ;;  %v2354_v42 = vld [vmem:[%s3016_s11 + $0x68] sm:$0x1]  ;;  %v1359_v45 = vshll.u32 %v2650_v32, 16  ;;  %v1423_v59 = vunpack.c.l.b16 %v2362_v51  ;;  %v2310_v51 = vld [vmem:[%s3016_s11 + $0x170] sm:$0x1] }
  0x96   : > { %v1832_v2 = vshll.u32 %v1794_v50, 16  ;;  %v1130_v40 = vor.u32 %v1129_v30, %v1125_v29  ;;  %v1154_v46 = vor.u32 %v1153_v37, %v1149_v36  ;;  %v1279_v50 = vunpack.c.l.b16 %v2354_v42  ;;  %v2396_v29 = vld [vmem:[%s3016_s11 + $0x128] sm:$0x1] }
  0x97   : > { %v1699_v5 = vsel %vm927_vm0, %v1694_v53, %v1698_v54  ;;  %v1132_v31 = vshll.u32 %v1061_v12, 16  ;;  %v2642_v53 = vld [vmem:[%s3016_s11 + $0xb4] sm:$0xff]  ;;  %v1361_v56 = vrot.slane %v1359_v45, 1  ;;  %v1383_v61 = vshll.u32 %v2652_v49, 16 }
  0x98   : > { %v1834_v17 = vrot.slane %v1832_v2, 1  ;;  %v1295_v60 = vpack.c.b16 %v1279_v50, %v1279_v50  ;;  %v1495_v63 = vshll.u32 %v2642_v53, 16  ;;  %v1431_v6 = vpack.c.b16 %v1423_v59, %v1423_v59  ;;  %v3197_v59 = vld [vmem:[%s3016_s11 + $0x1a4] sm:$0xff] }
  0x99   : > { %v1134_v41 = vrot.slane %v1132_v31, 1  ;;  %v1381_v7 = vshrl.u32 %v2652_v49, 16  ;;  %v1385_v8 = vrot.slane %v1383_v61, 1  ;;  %v1493_v13 = vshrl.u32 %v2642_v53, 16  ;;  %v2308_v49 = vld [vmem:[%s3016_s11 + $0x158] sm:$0x1] }
  0x9a   : > { %1396 = vrot.lane.b32.xlu2 %v1331_v21, %s2812_s23  ;;  %v1063_v21 = vpack.c.b16 %v1055_v10, %v1055_v10  ;;  %v1835_v28 = vsel %vm927_vm0, %v1830_v16, %v1834_v17  ;;  %v1388_v10 = vshll.u32 %v1295_v60, 16  ;;  %v2294_v17 = vld [vmem:[%s3016_s11 + $0x104] sm:$0x1]  ;;  %v1517_v12 = vshrl.u32 %v2644_v0, 16  ;;  %v3202_v61 = vld [vmem:[%s3016_s11 + $0x150] sm:$0xff] }
  0x9b   : > { %v1135_v52 = vsel %vm927_vm0, %v1130_v40, %v1134_v41  ;;  %v1386_v22 = vor.u32 %v1385_v8, %v1381_v7  ;;  %v2668_v41 = vld [vmem:[%s3016_s11 + $0x138] sm:$0xff]  ;;  %vm2089_vm1 = vcmask 1041408   ;;  %vm1912_vm2 = vcmask 31744  }
  0x9c   : > { %1220 = vrot.lane.b32.xlu0 %v2639_v55, %s2809_s12  ;;  %v1675_v55 = vsel %vm927_vm0, %v1670_v43, %v1674_v44  ;;  %v2360_v43 = vld [vmem:[%s3016_s11 + $0xbc] sm:$0x1]  ;;  %v1749_v7 = vshrl.u32 %v2668_v41, 16  ;;  %vm1929_vm3 = vcmask 64512   ;;  %vm1946_vm4 = vcmask 97280  }
  0x9d   : > { %1392 = vrot.lane.b32.xlu1 %v1307_v14, %s2812_s23  ;;  %v926_v14 = vpack.c.b16 %v910_v62, %v910_v62  ;;  %v1421_v54 = vunpack.c.l.b16 %v2360_v43  ;;  %vm1963_vm5 = vcmask 130048   ;;  %vm1980_vm6 = vcmask 162816  }
  0x9e   : > { %vm1997_vm7 = vcmask 195584   ;;  %vm2014_vm8 = vcmask 228352   ;;  %vm2031_vm9 = vcmask 261120   ;;  %vm2072_vm10 = vcmask 293888  }
  0x9f   : > { %v1020_v27 = vshll.u32 %v926_v14, 16  ;;  %v1429_v1 = vpack.c.b16 %v1421_v54, %v1421_v54  ;;  %v1497_v14 = vrot.slane %v1495_v63, 1  ;;  %v3194_v54 = vld [vmem:[%s3016_s11 + $0x18c] sm:$0xff]  ;;  %v1049_v63 = vunpack.c.l.b16 %v2308_v49 }
  0xa1   : > { %v1022_v39 = vrot.slane %v1020_v27, 1  ;;  %v1500_v15 = vshll.u32 %v1429_v1, 16  ;;  %v2632_v27 = vld [vmem:[%s3016_s11 + $0xfc] sm:$0xff] }
  0xa2   : > { %1584 = vrot.lane.b32.xlu2 %v2653_v35, %s2814_s26  ;;  %v999_v35 = vsel %vm927_vm0, %v994_v19, %v998_v20  ;;  %v1524_v19 = vshll.u32 %v1431_v6, 16  ;;  %v2630_v20 = vld [vmem:[%s3016_s11 + $0xe4] sm:$0xff]  ;;  %v967_v40 = vshll.u32 %v2632_v27, 16  ;;  %v965_v50 = vshrl.u32 %v2632_v27, 16 }
  0xa3   : > { %v1051_v6 = vunpack.c.l.b16 %v2310_v51  ;;  %v1863_v27 = vshll.u32 %v3194_v54, 16 }
  0xa4   : > { %1528 = vrot.lane.b32.xlu0 %v1443_v34, %s2813_s24  ;;  %v1273_v34 = vunpack.c.l.b16 %v2348_v23  ;;  %v1390_v23 = vrot.slane %v1388_v10, 1  ;;  %v1526_v31 = vrot.slane %v1524_v19, 1 }
  0xa5   : > { %1532 = vrot.lane.b32.xlu1 %v1467_v33, %s2813_s24  ;;  %v1156_v33 = vshll.u32 %v1063_v21, 16  ;;  %v892_v21 = vunpack.c.l.b16 %v2288_v11 }
  0xa6   : > { %v1291_v44 = vpack.c.b16 %v1273_v34, %v1273_v34  ;;  %v943_v34 = vshll.u32 %v2630_v20, 16  ;;  %v1391_v36 = vsel %vm927_vm0, %v1386_v22, %v1390_v23  ;;  %v2410_v22 = vld [vmem:[%s3016_s11 + $0x1ac] sm:$0x1] }
  0xa7   : > { %v1158_v47 = vrot.slane %v1156_v33, 1  ;;  %v2666_v33 = vld [vmem:[%s3016_s11 + $0x120] sm:$0xff] }
  0xa8   : > { %v1364_v57 = vshll.u32 %v1291_v44, 16  ;;  %v941_v44 = vshrl.u32 %v2630_v20, 16  ;;  %v945_v45 = vrot.slane %v943_v34, 1  ;;  %v1725_v1 = vshrl.u32 %v2666_v33, 16 }
  0xa9   : > { %v1159_v58 = vsel %vm927_vm0, %v1154_v46, %v1158_v47  ;;  %v1059_v20 = vpack.c.b16 %v1051_v6, %v1051_v6 }
  0xaa   : > { %1764 = vrot.lane.b32.xlu2 %v1699_v5, %s2815_s27  ;;  %v1366_v4 = vrot.slane %v1364_v57, 1  ;;  %v1519_v5 = vshll.u32 %v2644_v0, 16  ;;  %v946_v57 = vor.u32 %v945_v45, %v941_v44  ;;  %v1861_v44 = vshrl.u32 %v3194_v54, 16 }
  0xab   : > { %v1865_v45 = vrot.slane %v1863_v27, 1 }
  0xac   : > { %1588 = vrot.lane.b32.xlu0 %v2655_v38, %s2814_s26  ;;  %v1018_v38 = vor.u32 %v1017_v26, %v1013_v25  ;;  %v1521_v18 = vrot.slane %v1519_v5, 1  ;;  %v1502_v25 = vrot.slane %v1500_v15, 1  ;;  %v3206_v5 = vld [vmem:[%s3016_s11 + $0x168] sm:$0xff] }
  0xad   : > { %1760 = vrot.lane.b32.xlu1 %v1675_v55, %s2815_s27  ;;  %v1357_v55 = vshrl.u32 %v2650_v32, 16  ;;  %v914_v32 = vpack.c.b16 %v892_v21, %v892_v21  ;;  %v1103_v21 = vshll.u32 %v3206_v5, 16 }
  0xae   : > { %v1023_v48 = vsel %vm927_vm0, %v1018_v38, %v1022_v39  ;;  %v1522_v30 = vor.u32 %v1521_v18, %v1517_v12  ;;  %v1641_v38 = vunpack.c.l.b16 %v2396_v29  ;;  %v1077_v29 = vshrl.u32 %v3202_v61, 16 }
  0xaf   : > { %v1362_v2 = vor.u32 %v1361_v56, %v1357_v55  ;;  %v948_v46 = vshll.u32 %v914_v32, 16  ;;  %v969_v55 = vrot.slane %v967_v40, 1  ;;  %v1108_v40 = vshll.u32 %v1059_v20, 16 }
  0xb0   : > { %v1527_v43 = vsel %vm927_vm0, %v1522_v30, %v1526_v31  ;;  %v1659_v47 = vpack.c.b16 %v1641_v38, %v1641_v38  ;;  %v2052_v31 = vld [vmem:[%s3475_s1 + $0x10] sm:$0x3]  ;;  %v1101_v38 = vshrl.u32 %v3206_v5, 16 }
  0xb1   : > { %v1367_v16 = vsel %vm927_vm0, %v1362_v2, %v1366_v4  ;;  %v970_v11 = vor.u32 %v969_v55, %v965_v50  ;;  %v2336_v55 = vld [vmem:[%s3016_s11 + $0x20] sm:$0x1] }
  0xb2   : > { %1034 = vrot.lane.b32.xlu2 %v999_v35, %s2810_s21  ;;  %v2402_v35 = vld [vmem:[%s3016_s11 + $0x140] sm:$0x1]  ;;  %v1732_v4 = vshll.u32 %v1659_v47, 16 }
  0xb3   : > { %v1647_v42 = vunpack.c.l.b16 %v2402_v35 }
  0xb4   : > { %1896 = vrot.lane.b32.xlu0 %v1811_v24, %s2816_s28  ;;  %v1498_v24 = vor.u32 %v1497_v14, %v1493_v13  ;;  %v1734_v19 = vrot.slane %v1732_v4, 1 }
  0xb5   : > { %1900 = vrot.lane.b32.xlu1 %v1835_v28, %s2816_s28  ;;  %v898_v28 = vunpack.c.l.b16 %v2294_v17  ;;  %v1079_v17 = vshll.u32 %v3202_v61, 16 }
  0xb6   : > { %v1503_v37 = vsel %vm927_vm0, %v1498_v24, %v1502_v25 }
  0xb7   : > { %v918_v39 = vpack.c.b16 %v898_v28, %v898_v28  ;;  %v1081_v32 = vrot.slane %v1079_v17, 1  ;;  %v2356_v17 = vld [vmem:[%s3016_s11 + $0x8c] sm:$0x1] }
  0xb8   : > { %v3167_v62 = vpop.permute.xlu2 %1224 }
  0xb9   : > { %v972_v56 = vshll.u32 %v918_v39, 16  ;;  %v1105_v39 = vrot.slane %v1103_v21, 1  ;;  %v1082_v47 = vor.u32 %v1081_v32, %v1077_v29  ;;  %v1417_v21 = vunpack.c.l.b16 %v2356_v17 }
  0xba   : > { %1174 = vrot.lane.b32.xlu2 %v1159_v58, %s2811_s22  ;;  %v950_v58 = vrot.slane %v948_v46, 1 }
  0xbb   : > { %v974_v13 = vrot.slane %v972_v56, 1  ;;  %v1425_v32 = vpack.c.b16 %v1417_v21, %v1417_v21  ;;  %v2654_v21 = vld [vmem:[%s3016_s11 + $0x15c] sm:$0xff] }
  0xbc   : > { %1038 = vrot.lane.b32.xlu0 %v1023_v48, %s2810_s21  ;;  %v1727_v48 = vshll.u32 %v2666_v33, 16  ;;  %v951_v14 = vsel %vm927_vm0, %v946_v57, %v950_v58  ;;  %v1885_v57 = vshrl.u32 %v3197_v59, 16 }
  0xbd   : > { %1170 = vrot.lane.b32.xlu1 %v1135_v52, %s2811_s22  ;;  %v1663_v52 = vpack.c.b16 %v1647_v42, %v1647_v42  ;;  %v975_v28 = vsel %vm927_vm0, %v970_v11, %v974_v13 }
  0xbe   : > { %v1729_v2 = vrot.slane %v1727_v48, 1 }
  0xbf   : > { %v1756_v10 = vshll.u32 %v1663_v52, 16  ;;  %v1106_v52 = vor.u32 %v1105_v39, %v1101_v38 }
  0xc0   : > { %v3178_v26 = vpop.permute.xlu2 %1228  ;;  %v1730_v18 = vor.u32 %v1729_v2, %v1725_v1  ;;  %v2670_v1 = vld [vmem:[%s3475_s1 + $0x8] sm:$0xff] }
  0xc1   : > { %v1758_v25 = vrot.slane %v1756_v10, 1 }
  0xc2   : > { %1402 = vrot.lane.b32.xlu2 %v1367_v16, %s2812_s23  ;;  %v1057_v16 = vpack.c.b16 %v1049_v63, %v1049_v63  ;;  %v1735_v33 = vsel %vm927_vm0, %v1730_v18, %v1734_v19  ;;  %v1866_v63 = vor.u32 %v1865_v45, %v1861_v44 }
  0xc4   : > { %1226 = vrot.lane.b32.xlu0 %v2642_v53, %s2809_s12  ;;  %v1751_v53 = vshll.u32 %v2668_v41, 16  ;;  %v1084_v34 = vshll.u32 %v1057_v16, 16  ;;  %v1887_v41 = vshll.u32 %v3197_v59, 16  ;;  %v2669_v16 = vld [vmem:[%s3475_s1] sm:$0xff] }
  0xc5   : > { %1230 = vrot.lane.b32.xlu1 %v2644_v0, %s2809_s12  ;;  %v2408_v0 = vld [vmem:[%s3016_s11 + $0x194] sm:$0x1] }
  0xc6   : > { %v1753_v8 = vrot.slane %v1751_v53, 1  ;;  %v1789_v15 = vunpack.c.l.b16 %v2408_v0  ;;  %v1086_v48 = vrot.slane %v1084_v34, 1  ;;  %v1110_v53 = vrot.slane %v1108_v40, 1 }
  0xc7   : > { %v1889_v58 = vrot.slane %v1887_v41, 1 }
  0xc8   : > { %v1754_v24 = vor.u32 %v1753_v8, %v1749_v7  ;;  %v1797_v30 = vpack.c.b16 %v1789_v15, %v1789_v15  ;;  %v1087_v2 = vsel %vm927_vm0, %v1082_v47, %v1086_v48  ;;  %v2646_v7 = vld [vmem:[%s3016_s11 + $0x18] sm:$0xff]  ;;  %v1261_v8 = vunpack.c.l.b16 %v2336_v55  ;;  %v2358_v15 = vld [vmem:[%s3016_s11 + $0xa4] sm:$0x1] }
  0xc9   : > { %v1111_v10 = vsel %vm927_vm0, %v1106_v52, %v1110_v53  ;;  %v1890_v13 = vor.u32 %v1889_v58, %v1885_v57  ;;  %v1311_v20 = vshll.u32 %v2646_v7, 16  ;;  %v1419_v29 = vunpack.c.l.b16 %v2358_v15  ;;  %v2384_v53 = vld [vmem:[%s3016_s11 + $0xf8] sm:$0x1]  ;;  %v2390_v57 = vld [vmem:[%s3016_s11 + $0x110] sm:$0x1] }
  0xca   : > { %1542 = vrot.lane.b32.xlu2 %v1527_v43, %s2813_s24  ;;  %v1759_v42 = vsel %vm927_vm0, %v1754_v24, %v1758_v25  ;;  %v1868_v46 = vshll.u32 %v1797_v30, 16  ;;  %v1283_v19 = vpack.c.b16 %v1261_v8, %v1261_v8  ;;  %v2638_v24 = vld [vmem:[%s3016_s11 + $0x84] sm:$0xff]  ;;  %v1629_v8 = vunpack.c.l.b16 %v2384_v53 }
  0xcb   : > { %v1447_v30 = vshll.u32 %v2638_v24, 16  ;;  %v1445_v44 = vshrl.u32 %v2638_v24, 16 }
  0xcc   : > { %1406 = vrot.lane.b32.xlu0 %v1391_v36, %s2812_s23  ;;  %v3199_v60 = vpop.permute.xlu2 %1536  ;;  %v1791_v36 = vunpack.c.l.b16 %v2410_v22  ;;  %v1870_v0 = vrot.slane %v1868_v46, 1  ;;  %v1452_v46 = vshll.u32 %v1425_v32, 16  ;;  %v1651_v17 = vpack.c.b16 %v1629_v8, %v1629_v8  ;;  %v2750_v32 = vld [vmem:[%s3016_s11 + $0x18c] sm:$0xff] }
  0xcd   : > { %1538 = vrot.lane.b32.xlu1 %v1503_v37, %s2813_s24  ;;  %v2066_v37 = vunpack.c.l.b16 %v2052_v31  ;;  %v2640_v31 = vld [vmem:[%s3016_s11 + $0x9c] sm:$0xff]  ;;  %v1449_v45 = vrot.slane %v1447_v30, 1 }
  0xce   : > { %v1799_v49 = vpack.c.b16 %v1791_v36, %v1791_v36  ;;  %v1309_v36 = vshrl.u32 %v2646_v7, 16  ;;  %v2662_v7 = vld [vmem:[%s3016_s11 + $0xf0] sm:$0xff] }
  0xcf   : > { %v2069_v43 = vpack.c.b16 %v2066_v37, %v2066_v37  ;;  %v1313_v37 = vrot.slane %v1311_v20, 1 }
  0xd0   : > { %v1892_v4 = vshll.u32 %v1799_v49, 16 }
  0xd1   : > { %v2091_v50 = vsel %vm2089_vm1, %v2069_v43, 0  ;;  %v1471_v43 = vshll.u32 %v2640_v31, 16  ;;  %v1314_v47 = vor.u32 %v1313_v37, %v1309_v36  ;;  %v1815_v37 = vshll.u32 %v2654_v21, 16 }
  0xd2   : > { %1026 = vrot.lane.b32.xlu2 %v951_v14, %s2810_s21  ;;  %2672 = vmatpush.bf16.msra.mxu2 %v2091_v50  ;;  %v1871_v14 = vsel %vm927_vm0, %v1866_v63, %v1870_v0  ;;  %v1894_v18 = vrot.slane %v1892_v4, 1  ;;  %v1450_v0 = vor.u32 %v1449_v45, %v1445_v44 }
  0xd3   : > { %2673 = vmatpush.bf16.msra.mxu3 %v2091_v50  ;;  %2098 = vmatpush.bf16.msra.mxu0 %v2091_v50  ;;  %v1473_v58 = vrot.slane %v1471_v43, 1  ;;  %v2656_v43 = vld [vmem:[%s3016_s11 + $0x174] sm:$0xff] }
  0xd4   : > { %1594 = vrot.lane.b32.xlu0 %v3194_v54, %s2814_s26  ;;  %v3227_v35 = vpop.permute.xlu2 %1596  ;;  %v2342_v54 = vld [vmem:[%s3016_s11 + $0x38] sm:$0x1]  ;;  %2671 = vmatpush.bf16.msra.mxu1 %v2091_v50  ;;  %v1895_v34 = vsel %vm927_vm0, %v1890_v13, %v1894_v18  ;;  %v1679_v18 = vshll.u32 %v2662_v7, 16 }
  0xd5   : > { %1598 = vrot.lane.b32.xlu1 %v3197_v59, %s2814_s26  ;;  %v2648_v59 = vld [vmem:[%s3016_s11 + $0x30] sm:$0xff]  ;;  %v1267_v11 = vunpack.c.l.b16 %v2342_v54  ;;  %v1469_v54 = vshrl.u32 %v2640_v31, 16 }
  0xd6   : > { %v3214_v12 = vpop.permute.xlu0 %1032  ;;  %2675 = vmatpush.bf16.msra.mxu2 %v2670_v1  ;;  %v1335_v27 = vshll.u32 %v2648_v59, 16  ;;  %v1333_v39 = vshrl.u32 %v2648_v59, 16  ;;  %v2664_v59 = vld [vmem:[%s3016_s11 + $0x108] sm:$0xff] }
  0xd7   : > { %v3218_v23 = vpop.permute.xlu1 %1168  ;;  %2676 = vmatpush.bf16.msra.mxu3 %v2670_v1  ;;  %2099 = vmatpush.bf16.msra.mxu0 %v2670_v1  ;;  %v1287_v25 = vpack.c.b16 %v1267_v11, %v1267_v11  ;;  %v1635_v11 = vunpack.c.l.b16 %v2390_v57  ;;  %v1474_v13 = vor.u32 %v1473_v58, %v1469_v54  ;;  %v1701_v44 = vshrl.u32 %v2664_v59, 16 }
  0xd8   : > { %2674 = vmatpush.bf16.msra.mxu1 %v2670_v1  ;;  %v1337_v40 = vrot.slane %v1335_v27, 1  ;;  %v1454_v1 = vrot.slane %v1452_v46, 1  ;;  %v2406_v27 = vld [vmem:[%s3016_s11 + $0x17c] sm:$0x1]  ;;  %v1839_v58 = vshll.u32 %v2656_v43, 16 }
  0xd9   : > { %v1340_v41 = vshll.u32 %v1287_v25, 16  ;;  %v1703_v25 = vshll.u32 %v2664_v59, 16 }
  0xda   : > { %1774 = vrot.lane.b32.xlu2 %v1759_v42, %s2815_s27  ;;  %2678 = vmatpush.bf16.msra.mxu2 %v2669_v16  ;;  %v1427_v42 = vpack.c.b16 %v1419_v29, %v1419_v29  ;;  %v1338_v50 = vor.u32 %v1337_v40, %v1333_v39  ;;  %v1455_v15 = vsel %vm927_vm0, %v1450_v0, %v1454_v1  ;;  %v2749_v29 = vld [vmem:[%s3016_s11 + $0x174] sm:$0xff]  ;;  %v1677_v39 = vshrl.u32 %v2662_v7, 16 }
  0xdb   : > { %2679 = vmatpush.bf16.msra.mxu3 %v2669_v16  ;;  %2100 = vmatpush.bf16.msra.mxu0 %v2669_v16  ;;  %v1342_v52 = vrot.slane %v1340_v41, 1  ;;  %v1922_v30 = vsel %vm1912_vm2, %v2749_v29, %v3214_v12  ;;  %v1681_v40 = vrot.slane %v1679_v18, 1  ;;  %v1684_v41 = vshll.u32 %v1651_v17, 16 }
  0xdc   : > { %1030 = vrot.lane.b32.xlu0 %v975_v28, %s2810_s21  ;;  %v3248_v6 = vpop.permute.xlu2 %1768  ;;  %2677 = vmatpush.bf16.msra.mxu1 %v2669_v16  ;;  %v1476_v63 = vshll.u32 %v1427_v42, 16  ;;  %v2404_v16 = vld [vmem:[%s3016_s11 + $0x164] sm:$0x1]  ;;  %v1787_v12 = vunpack.c.l.b16 %v2406_v27  ;;  %v1705_v45 = vrot.slane %v1703_v25, 1 }
  0xdd   : > { %1770 = vrot.lane.b32.xlu1 %v1735_v33, %s2815_s27  ;;  %v1316_v33 = vshll.u32 %v1283_v19, 16  ;;  %v1785_v19 = vunpack.c.l.b16 %v2404_v16  ;;  %v1682_v53 = vor.u32 %v1681_v40, %v1677_v39  ;;  %v1686_v54 = vrot.slane %v1684_v41, 1  ;;  %v2752_v39 = vld [vmem:[%s3016_s11 + $0x144] sm:$0xff] }
  0xde   : > { %v3236_v51 = vpop.permute.xlu0 %1036  ;;  %v1795_v57 = vpack.c.b16 %v1787_v12, %v1787_v12  ;;  %v1706_v0 = vor.u32 %v1705_v45, %v1701_v44 }
  0xdf   : > { %v3239_v56 = vpop.permute.xlu1 %1172  ;;  %v1318_v48 = vrot.slane %v1316_v33, 1  ;;  %v1793_v33 = vpack.c.b16 %v1785_v19, %v1785_v19  ;;  %v1687_v59 = vsel %vm927_vm0, %v1682_v53, %v1686_v54 }
  0xe2   : > { %1906 = vrot.lane.b32.xlu2 %v1871_v14, %s2816_s28  ;;  %v1478_v14 = vrot.slane %v1476_v63, 1 }
  0xe4   : > { %1162 = vrot.lane.b32.xlu0 %v1087_v2, %s2811_s22  ;;  %v3269_v38 = vpop.permute.xlu2 %1164  ;;  %v1319_v2 = vsel %vm927_vm0, %v1314_v47, %v1318_v48  ;;  %v1479_v36 = vsel %vm927_vm0, %v1474_v13, %v1478_v14  ;;  %v1939_v47 = vsel %vm1929_vm3, %v1922_v30, %v3218_v23  ;;  %v1813_v48 = vshrl.u32 %v2654_v21, 16 }
  0xe5   : > { %1166 = vrot.lane.b32.xlu1 %v1111_v10, %s2811_s22  ;;  %v1343_v10 = vsel %vm927_vm0, %v1338_v50, %v1342_v52  ;;  %v1817_v50 = vrot.slane %v1815_v37, 1  ;;  %v1820_v52 = vshll.u32 %v1793_v33, 16  ;;  %v1956_v63 = vsel %vm1946_vm4, %v1939_v47, %v3167_v62  ;;  %v2751_v37 = vld [vmem:[%s3016_s11 + $0x15c] sm:$0xff]  ;;  %s2266_s11 = sshll.u32 %s668_s10, 3 }
  0xe6   : > { %v3261_v22 = vpop.permute.xlu0 %1400  ;;  %v1841_v62 = vrot.slane %v1839_v58, 1  ;;  %v1844_v13 = vshll.u32 %v1795_v57, 16 }
  0xe7   : > { %v3264_v28 = vpop.permute.xlu1 %1404  ;;  %v1818_v8 = vor.u32 %v1817_v50, %v1813_v48 }
  0xe8   : > { %v1846_v19 = vrot.slane %v1844_v13, 1 }
  0xea   : > { %1222 = vrot.lane.b32.xlu2 %v2640_v31, %s2809_s12 }
  0xec   : > { %1910 = vrot.lane.b32.xlu0 %v1895_v34, %s2816_s28  ;;  %v3281_v4 = vpop.permute.xlu2 %1216  ;;  %v1926_v34 = vsel %vm1912_vm2, %v2750_v32, %v3236_v51 }
  0xed   : > { %1218 = vrot.lane.b32.xlu1 %v2638_v24, %s2809_s12  ;;  %v1655_v24 = vpack.c.b16 %v1635_v11, %v1635_v11  ;;  %v1943_v51 = vsel %vm1929_vm3, %v1926_v34, %v3239_v56  ;;  %v1973_v56 = vsel %vm1963_vm5, %v1956_v63, %v3261_v22  ;;  %v1837_v11 = vshrl.u32 %v2656_v43, 16 }
  0xee   : > { %v3273_v49 = vpop.permute.xlu0 %1540  ;;  %v1960_v7 = vsel %vm1946_vm4, %v1943_v51, %v3178_v26  ;;  %v1990_v22 = vsel %vm1980_vm6, %v1973_v56, %v3199_v60 }
  0xef   : > { %v3276_v55 = vpop.permute.xlu1 %1592  ;;  %v1708_v46 = vshll.u32 %v1655_v24, 16 }
  0xf0   : > { %v2007_v17 = vsel %vm1997_vm7, %v1990_v22, %v3276_v55 }
  0xf1   : > { %v1710_v1 = vrot.slane %v1708_v46, 1  ;;  %v2024_v60 = vsel %vm2014_vm8, %v2007_v17, %v3248_v6 }
  0xf2   : > { %1530 = vrot.lane.b32.xlu2 %v1455_v15, %s2813_s24  ;;  %v1977_v15 = vsel %vm1963_vm5, %v1960_v7, %v3264_v28  ;;  %v1842_v28 = vor.u32 %v1841_v62, %v1837_v11 }
  0xf3   : > { %v1711_v16 = vsel %vm927_vm0, %v1706_v0, %v1710_v1  ;;  %v1994_v26 = vsel %vm1980_vm6, %v1977_v15, %v3273_v49 }
  0xf4   : > { %1394 = vrot.lane.b32.xlu0 %v1319_v2, %s2812_s23  ;;  %v3304_v42 = vpop.permute.xlu2 %1396  ;;  %v2011_v49 = vsel %vm1997_vm7, %v1994_v26, %v3227_v35  ;;  %v1847_v6 = vsel %vm927_vm0, %v1842_v28, %v1846_v19 }
  0xf5   : > { %1398 = vrot.lane.b32.xlu1 %v1343_v10, %s2812_s23  ;;  %v1822_v10 = vrot.slane %v1820_v52, 1 }
  0xf6   : > { %v3290_v20 = vpop.permute.xlu0 %1024 }
  0xf7   : > { %v3297_v31 = vpop.permute.xlu1 %1028  ;;  %v1823_v18 = vsel %vm927_vm0, %v1818_v8, %v1822_v10  ;;  %v1914_v40 = vsel %vm1912_vm2, %v2752_v39, %v3290_v20 }
  0xf8   : > { %v1918_v33 = vsel %vm1912_vm2, %v2751_v37, %v3297_v31 }
  0xf9   : > { %v1935_v12 = vsel %vm1929_vm3, %v1918_v33, %v3269_v38 }
  0xfa   : > { %1590 = vrot.lane.b32.xlu2 %v2656_v43, %s2814_s26 }
  0xfc   : > { %1534 = vrot.lane.b32.xlu0 %v1479_v36, %s2813_s24  ;;  %v1585_v14 = vpop.permute.xlu2 %1584  ;;  %s3419_s24 = scalar_lea.vmem %s3477_s3, %s2266_s11 }
  0xfd   : > { %1586 = vrot.lane.b32.xlu1 %v2654_v21, %s2814_s26 }
  0xfe   : > { %v1773_v23 = vpop.permute.xlu0 %1772 }
  0xff   : > { %v1161_v2 = vpop.permute.xlu1 %1160  ;;  %v2028_v55 = vsel %vm2014_vm8, %v2011_v49, %v1773_v23 }
 0x100   : > { %v1931_v43 = vsel %vm1929_vm3, %v1914_v40, %v1161_v2 }
 0x101   : > { %v1948_v47 = vsel %vm1946_vm4, %v1931_v43, %v3281_v4 }
 0x102   : > { %1898 = vrot.lane.b32.xlu2 %v1823_v18, %s2816_s28 }
 0x104   : > { %1762 = vrot.lane.b32.xlu0 %v1687_v59, %s2815_s27  ;;  %v1765_v29 = vpop.permute.xlu2 %1764 }
 0x105   : > { %1766 = vrot.lane.b32.xlu1 %v1711_v16, %s2815_s27 }
 0x106   : > { %v1905_v21 = vpop.permute.xlu0 %1904 }
 0x107   : > { %v1909_v24 = vpop.permute.xlu1 %1908  ;;  %v2041_v25 = vsel %vm2031_vm9, %v2024_v60, %v1905_v21 }
 0x108   : > { %2615 = vmatmul.msk.bf16.vlgmr.msra.gmra.mxu2 %vm2072_vm10, %v2041_v25  ;;  %v2045_v27 = vsel %vm2031_vm9, %v2028_v55, %v1909_v24 }
 0x109   : > { %2617 = vmatmul.msk.bf16.vlgmr.msra.gmra.mxu3 %vm2072_vm10, %v2045_v27 }
 0x10c   : > { %1902 = vrot.lane.b32.xlu0 %v1847_v6, %s2816_s28  ;;  %v1035_v32 = vpop.permute.xlu2 %1034 }
 0x10d   : > { %v1924_v59 = vsel %vm1912_vm2, %v3136_v3, %v1035_v32 }
 0x10e   : > { %v1221_v35 = vpop.permute.xlu0 %1220 }
 0x10f   : > { %v1393_v30 = vpop.permute.xlu1 %1392  ;;  %v1952_v45 = vsel %vm1946_vm4, %v1935_v12, %v1221_v35 }
 0x110   : > { %v1965_v51 = vsel %vm1963_vm5, %v1948_v47, %v1393_v30  ;;  %v1969_v20 = vsel %vm1963_vm5, %v1952_v45, %v3304_v42 }
 0x114   : > { %v1175_v41 = vpop.permute.xlu2 %1174 }
 0x116   : > { %v1529_v34 = vpop.permute.xlu0 %1528 }
 0x117   : > { %v1533_v36 = vpop.permute.xlu1 %1532  ;;  %v1982_v31 = vsel %vm1980_vm6, %v1965_v51, %v1529_v34 }
 0x118   : > { %v1986_v48 = vsel %vm1980_vm6, %v1969_v20, %v1533_v36  ;;  %v1999_v38 = vsel %vm1997_vm7, %v1982_v31, %v1585_v14 }
 0x11c   : > { %v1403_v54 = vpop.permute.xlu2 %1402 }
 0x11e   : > { %v1589_v44 = vpop.permute.xlu0 %1588 }
 0x11f   : > { %v1761_v46 = vpop.permute.xlu1 %1760  ;;  %v2003_v50 = vsel %vm1997_vm7, %v1986_v48, %v1589_v44 }
 0x120   : > { %v2016_v52 = vsel %vm2014_vm8, %v1999_v38, %v1761_v46  ;;  %v2020_v58 = vsel %vm2014_vm8, %v2003_v50, %v1765_v29 }
 0x124   : > { %v1543_v0 = vpop.permute.xlu2 %1542 }
 0x126   : > { %v1897_v53 = vpop.permute.xlu0 %1896 }
 0x127   : > { %v1901_v57 = vpop.permute.xlu1 %1900  ;;  %v2033_v4 = vsel %vm2031_vm9, %v2016_v52, %v1897_v53 }
 0x128   : > { %2611 = vmatmul.msk.bf16.vlgmr.msra.gmra.mxu0 %vm2072_vm10, %v2033_v4  ;;  %v2037_v63 = vsel %vm2031_vm9, %v2020_v58, %v1901_v57  ;;  %v2748_v4 = vld [vmem:[%s3476_s2] ss:$0 sm:$0xff] }
 0x129   : > { %2613 = vmatmul.msk.bf16.vlgmr.msra.gmra.mxu1 %vm2072_vm10, %v2037_v63 }
 0x12c   : > { %v1027_v2 = vpop.permute.xlu2 %1026 }
 0x12d   : > { %v1916_v39 = vsel %vm1912_vm2, %v3202_v61, %v1027_v2 }
 0x12e   : > { %v1039_v42 = vpop.permute.xlu0 %1038 }
 0x12f   : > { %v1171_v23 = vpop.permute.xlu1 %1170  ;;  %v1928_v3 = vsel %vm1912_vm2, %v3141_v9, %v1039_v42 }
 0x130   : > { %v1941_v13 = vsel %vm1929_vm3, %v1924_v59, %v1171_v23  ;;  %v1945_v60 = vsel %vm1929_vm3, %v1928_v3, %v1175_v41 }
 0x134   : > { %v1775_v10 = vpop.permute.xlu2 %1774 }
 0x136   : > { %v1227_v1 = vpop.permute.xlu0 %1226 }
 0x137   : > { %v1231_v56 = vpop.permute.xlu1 %1230  ;;  %v1958_v14 = vsel %vm1946_vm4, %v1941_v13, %v1227_v1 }
 0x138   : > { %v1975_v15 = vsel %vm1963_vm5, %v1958_v14, %v1403_v54  ;;  %v1962_v49 = vsel %vm1946_vm4, %v1945_v60, %v1231_v56 }
 0x13c   : > { %v1907_v26 = vpop.permute.xlu2 %1906 }
 0x13e   : > { %v1407_v7 = vpop.permute.xlu0 %1406 }
 0x13f   : > { %v1539_v8 = vpop.permute.xlu1 %1538  ;;  %v1979_v55 = vsel %vm1963_vm5, %v1962_v49, %v1407_v7 }
 0x140   : > { %v1992_v22 = vsel %vm1980_vm6, %v1975_v15, %v1539_v8  ;;  %v1996_v27 = vsel %vm1980_vm6, %v1979_v55, %v1543_v0 }
 0x144   : > { %v1223_v25 = vpop.permute.xlu2 %1222 }
 0x146   : > { %v1595_v11 = vpop.permute.xlu0 %1594 }
 0x147   : > { %v1599_v62 = vpop.permute.xlu1 %1598  ;;  %v2009_v17 = vsel %vm1997_vm7, %v1992_v22, %v1595_v11 }
 0x148   : > { %v2013_v6 = vsel %vm1997_vm7, %v1996_v27, %v1599_v62 }
 0x149   : > { %v2030_v29 = vsel %vm2014_vm8, %v2013_v6, %v1775_v10 }
 0x14c   : > { %v1531_v32 = vpop.permute.xlu2 %1530 }
 0x14e   : > { %v1031_v16 = vpop.permute.xlu0 %1030 }
 0x14f   : > { %v1771_v18 = vpop.permute.xlu1 %1770  ;;  %v1920_v44 = vsel %vm1912_vm2, %v3206_v5, %v1031_v16 }
 0x150   : > { %v2026_v28 = vsel %vm2014_vm8, %v2009_v17, %v1771_v18 }
 0x151   : > { %v2043_v19 = vsel %vm2031_vm9, %v2026_v28, %v1907_v26 }
 0x152   : > { %2616 = vmatmul.msk.bf16.gmra.mxu2 %vm2072_vm10, %v2043_v19 }
 0x154   : > { %v1591_v37 = vpop.permute.xlu2 %1590 }
 0x156   : > { %v1163_v21 = vpop.permute.xlu0 %1162 }
 0x157   : > { %v1167_v24 = vpop.permute.xlu1 %1166  ;;  %v1933_v40 = vsel %vm1929_vm3, %v1916_v39, %v1163_v21 }
 0x158   : > { %v1937_v45 = vsel %vm1929_vm3, %v1920_v44, %v1167_v24 }
 0x159   : > { %v1954_v20 = vsel %vm1946_vm4, %v1937_v45, %v1223_v25 }
 0x15c   : > { %v1899_v47 = vpop.permute.xlu2 %1898 }
 0x15e   : > { %v1911_v35 = vpop.permute.xlu0 %1910 }
 0x15f   : > { %v1219_v30 = vpop.permute.xlu1 %1218  ;;  %v2047_v9 = vsel %vm2031_vm9, %v2030_v29, %v1911_v35 }
 0x160   : > { %2618 = vmatmul.msk.bf16.gmra.mxu3 %vm2072_vm10, %v2047_v9  ;;  %v1950_v41 = vsel %vm1946_vm4, %v1933_v40, %v1219_v30 }
 0x166   : > { %v1395_v34 = vpop.permute.xlu0 %1394 }
 0x167   : > { %v1399_v36 = vpop.permute.xlu1 %1398  ;;  %v1967_v12 = vsel %vm1963_vm5, %v1950_v41, %v1395_v34 }
 0x168   : > { %v1984_v46 = vsel %vm1980_vm6, %v1967_v12, %v1531_v32  ;;  %v1971_v50 = vsel %vm1963_vm5, %v1954_v20, %v1399_v36 }
 0x16e   : > { %v1535_v33 = vpop.permute.xlu0 %1534 }
 0x16f   : > { %v1587_v43 = vpop.permute.xlu1 %1586  ;;  %v1988_v5 = vsel %vm1980_vm6, %v1971_v50, %v1535_v33 }
 0x170   : > { %v2001_v51 = vsel %vm1997_vm7, %v1984_v46, %v1587_v43  ;;  %v2005_v52 = vsel %vm1997_vm7, %v1988_v5, %v1591_v37 }
 0x176   : > { %v1763_v61 = vpop.permute.xlu0 %1762 }
 0x177   : > { %v2018_v31 = vsel %vm2014_vm8, %v2001_v51, %v1763_v61  ;;  %v1767_v38 = vpop.permute.xlu1 %1766 }
 0x178   : > { %v2035_v48 = vsel %vm2031_vm9, %v2018_v31, %v1899_v47  ;;  %v2022_v53 = vsel %vm2014_vm8, %v2005_v52, %v1767_v38 }
 0x179   : > { %2612 = vmatmul.msk.bf16.gmra.mxu0 %vm2072_vm10, %v2035_v48 }
 0x17e   : > { %v1903_v54 = vpop.permute.xlu0 %1902 }
 0x17f   : > { %v2039_v57 = vsel %vm2031_vm9, %v2022_v53, %v1903_v54 }
 0x180   : > { %2614 = vmatmul.msk.bf16.gmra.mxu1 %vm2072_vm10, %v2039_v57 }
 0x18b   : > { %v2122_v58 = vpop.f32.mrf.mxu2 }
 0x18c   : > { %v2123_v63 = vadd.f32 %v2748_v4, %v2122_v58  ;;  %v2132_v42 = vpop.f32.mrf.mxu3 }
 0x18d   : > { %v2133_v23 = vadd.f32 %v2748_v4, %v2132_v42 }
 0x18e   : > { %2150 = vst.msk [vmem:[%s3419_s24 + $0x40] sm:$0xff] %vm1929_vm3, %v2123_v63 }
 0x18f   : > { %2154 = vst.msk [vmem:[%s3419_s24 + $0x60] sm:$0xff] %vm1929_vm3, %v2133_v23 }
 0x193   : > { %v2124_v0 = vpop.f32.mrf.mxu2 }
 0x194   : > { %v2125_v1 = vadd.f32 %v2748_v4, %v2124_v0  ;;  %v2134_v56 = vpop.f32.mrf.mxu3 }
 0x195   : > { %v2135_v2 = vadd.f32 %v2748_v4, %v2134_v56 }
 0x196   : > { %2151 = vst.msk [vmem:[%s3419_s24 + $0x48] sm:$0xff] %vm1929_vm3, %v2125_v1 }
 0x197   : > { %2155 = vst.msk [vmem:[%s3419_s24 + $0x68] sm:$0xff] %vm1929_vm3, %v2135_v2 }
 0x1a5   : > { %v2102_v7 = vpop.f32.mrf.mxu0 }
 0x1a6   : > { %v2103_v8 = vadd.f32 %v2748_v4, %v2102_v7  ;;  %v2112_v10 = vpop.f32.mrf.mxu1 }
 0x1a7   : > { %v2113_v59 = vadd.f32 %v2748_v4, %v2112_v10 }
 0x1a8   : > { %2142 = vst.msk [vmem:[%s3419_s24] sm:$0xff] %vm1929_vm3, %v2103_v8 }
 0x1a9   : > { %2146 = vst.msk [vmem:[%s3419_s24 + $0x20] sm:$0xff] %vm1929_vm3, %v2113_v59 }
 0x1ad   : > { %v2104_v11 = vpop.f32.mrf.mxu0 }
 0x1ae   : > { %v2105_v62 = vadd.f32 %v2748_v4, %v2104_v11  ;;  %v2114_v13 = vpop.f32.mrf.mxu1 }
 0x1af   : > { %v2115_v14 = vadd.f32 %v2748_v4, %v2114_v13 }
 0x1b0   : > { %2143 = vst.msk [vmem:[%s3419_s24 + $0x8] sm:$0xff] %vm1929_vm3, %v2105_v62 }
 0x1b1   : > { %2147 = vst.msk [vmem:[%s3419_s24 + $0x28] sm:$0xff] %vm1929_vm3, %v2115_v14 }
 0x1d5   : > { %v2127_v15 = vpop.f32.mrf.mxu2 }
 0x1d6   : > { %v2128_v22 = vadd.f32 %v2748_v4, %v2127_v15 }
 0x1d8   : > { %2152 = vst.msk [vmem:[%s3419_s24 + $0x50] sm:$0xff] %vm1929_vm3, %v2128_v22 }
 0x1dd   : > { %v2129_v16 = vpop.f32.mrf.mxu2 }
 0x1de   : > { %v2130_v26 = vadd.f32 %v2748_v4, %v2129_v16 }
 0x1e0   : > { %2153 = vst.msk [vmem:[%s3419_s24 + $0x58] sm:$0xff] %vm1929_vm3, %v2130_v26 }
 0x1e3   : > { %v2137_v17 = vpop.f32.mrf.mxu3 }
 0x1e4   : > { %v2138_v18 = vadd.f32 %v2748_v4, %v2137_v17 }
 0x1e6   : > { %2156 = vst.msk [vmem:[%s3419_s24 + $0x70] sm:$0xff] %vm1929_vm3, %v2138_v18 }
 0x1eb   : > { %v2139_v28 = vpop.f32.mrf.mxu3 }
 0x1ec   : > { %v2140_v19 = vadd.f32 %v2748_v4, %v2139_v28 }
 0x1ee   : > { %2157 = vst.msk [vmem:[%s3419_s24 + $0x78] sm:$0xff] %vm1929_vm3, %v2140_v19 }
 0x1f6   : > { %v2107_v3 = vpop.f32.mrf.mxu0 }
 0x1f7   : > { %v2108_v60 = vadd.f32 %v2748_v4, %v2107_v3 }
 0x1f9   : > { %2144 = vst.msk [vmem:[%s3419_s24 + $0x10] sm:$0xff] %vm1929_vm3, %v2108_v60 }
 0x1fd   : > { %v2117_v49 = vpop.f32.mrf.mxu1 }
 0x1fe   : > { %v2118_v21 = vadd.f32 %v2748_v4, %v2117_v49  ;;  %v2109_v55 = vpop.f32.mrf.mxu0 }
 0x1ff   : > { %v2110_v24 = vadd.f32 %v2748_v4, %v2109_v55 }
 0x200   : > { %2148 = vst.msk [vmem:[%s3419_s24 + $0x30] sm:$0xff] %vm1929_vm3, %v2118_v21 }
 0x201   : > { %2145 = vst.msk [vmem:[%s3419_s24 + $0x18] sm:$0xff] %vm1929_vm3, %v2110_v24 }
 0x205   : > { %v2119_v25 = vpop.f32.mrf.mxu1 }
 0x206   : > { %v2120_v27 = vadd.f32 %v2748_v4, %v2119_v25 }
 0x208   : > { %2149 = vst.msk [vmem:[%s3419_s24 + $0x38] sm:$0xff] %vm1929_vm3, %v2120_v27 }
 0x209 PF: > { %s13_s18 = sadd.s32 1, %s2807_s18   ;;  %s3478_s12 = smov %s2787_s13 }
 0x20a   : > { %p10_p12 = scmp.ge.s32.totalorder %s13_s18, 6   ;;  %s3479_s13 = smov %s2888_s25 }
 0x20b   : > { %s3480_s14 = smov %s2799_s16  ;;  %s3481_s15 = smov %s2803_s17 }
 0x20c   : > { %s3482_s16 = smov %s3485_s19  ;;  %s3483_s17 = smov %s3489_s20 }
 0x20d   :  { %12 = sbr.rel (!%p10_p12) target bundleno = 4 (0x4), region = 114 }

</bundles_post_ra>
